<compile_context>
chip_gen: v7x
topology: tpu7x:2x2x1
jax: 0.10.0
libtpu: 0.0.40
codegen_flags: <defaults>
</compile_context>

<pallas_src>
import functools

import jax
import jax.numpy as jnp
from jax import lax
from jax.experimental import pallas as pl
from jax.experimental.pallas import tpu as pltpu


def _round_up(x, m):
    return (x + m - 1) // m * m


# ----------------------------------------------------------------------------
# pltpu.roll direction probe (falls back to concat shifts if roll misbehaves)
# ----------------------------------------------------------------------------
def _roll_probe_kernel(x_ref, o_ref):
    o_ref[...] = pltpu.roll(x_ref[...], 3, 1)


@functools.lru_cache(maxsize=None)
def _detect_roll_mode():
    n = 256
    x = jnp.tile(jnp.arange(n, dtype=jnp.float32)[None, :], (8, 1))
    try:
        y = pl.pallas_call(
            _roll_probe_kernel,
            out_shape=jax.ShapeDtypeStruct((8, n), jnp.float32),
        )(x)
        y = jax.block_until_ready(y)
    except Exception:
        return "concat"
    if bool(jnp.array_equal(y, jnp.roll(x, 3, axis=1))):
        return "fwd"      # pltpu.roll(x, s): out[k] = x[k - s]
    if bool(jnp.array_equal(y, jnp.roll(x, -3, axis=1))):
        return "bwd"      # pltpu.roll(x, s): out[k] = x[k + s]
    return "concat"


# ----------------------------------------------------------------------------
# Fused ENC_Conv kernel: conv1 -> conv2 -> conv3 (-> blind pool, rows decimated)
# ----------------------------------------------------------------------------
def enc_conv_kernel(x_ref, w1_ref, w2_ref, w3_ref, o_ref, *,
                    H, W, cin_pad, cout, reduce, mxu_dtype, roll_mode):
    HW = H * W
    cast_for_mxu = jnp.dtype(mxu_dtype) != jnp.dtype(jnp.float32)

    def lane_roll(a, shift):
        """out[:, k] = a[:, (k - shift) % HW]  (jnp.roll semantics, lane axis)."""
        s = shift % HW
        if s == 0:
            return a
        if roll_mode == "fwd":
            return pltpu.roll(a, s, 1)
        if roll_mode == "bwd":
            return pltpu.roll(a, HW - s, 1)
        # Fallback: two static lane slices + concat (validated in v1 of this kernel).
        return jnp.concatenate([a[:, HW - s:], a[:, :HW - s]], axis=1)

    # Edge masks, built once per distinct (padded) channel width and hoisted so the
    # per-tap jnp.where calls never re-broadcast a (1, HW) mask.
    mask_cache = {}

    def masks(c):
        if c not in mask_cache:
            lane = lax.broadcasted_iota(jnp.int32, (c, HW), 1)
            col = lane & (W - 1)          # W is a power of two (wrapper asserts)
            mask_cache[c] = {
                "first": col == 0,
                "last": col == W - 1,
                "top1": lane < W,
                "top2": lane < 2 * W,
            }
        return mask_cache[c]

    def blind_conv(a, w_ref):
        """Blind Conv block (shift-down -> 3x3 replicate-pad conv -> LeakyReLU(0.1)
        -> crop last row) as 3 accumulating MXU matmuls (K = 3*Cin_pad, one per ky).
        a: (Cin_pad, HW) f32.  w_ref: (3, Cout_pad, 3*Cin_pad), (kx, cin)-ordered K."""
        m = masks(a.shape[0])
        acc = None
        for ky in range(3):
            d = 2 - ky                                    # blind row shift for this tap
            rows = lane_roll(a, d * W)
            if d == 1:
                rows = jnp.where(m["top1"], 0.0, rows)    # zero-fill shifted-in rows
            elif d == 2:
                rows = jnp.where(m["top2"], 0.0, rows)
            left = jnp.where(m["first"], rows, lane_roll(rows, 1))     # col j-1 (repl.)
            right = jnp.where(m["last"], rows, lane_roll(rows, -1))    # col j+1 (repl.)
            patch = jnp.concatenate([left, rows, right], axis=0)       # (3*Cin_pad, HW)
            if cast_for_mxu:
                patch = patch.astype(mxu_dtype)
            part = jnp.dot(w_ref[ky], patch, preferred_element_type=jnp.float32)
            acc = part if acc is None else acc + part
        return jnp.maximum(acc, 0.1 * acc)                # LeakyReLU(0.1), one VPU max

    a = x_ref[...].astype(jnp.float32)                    # (Cin, HW) lane-dense
    cin = a.shape[0]
    if cin_pad > cin:                                     # sublane-align the K segments
        a = jnp.concatenate(
            [a, jnp.zeros((cin_pad - cin, HW), jnp.float32)], axis=0)

    a = blind_conv(a, w1_ref)
    a = blind_conv(a, w2_ref)
    a = blind_conv(a, w3_ref)                             # (Cout_pad, HW)

    if reduce:
        # Blind pool: shift down one row (zero top), 2x2 window max, write ONLY even
        # rows.  Roll wrap-around filler appears only at odd rows / odd columns,
        # which are never consumed downstream (odd rows dropped here, odd columns
        # dropped by the wrapper's stride-2 column slice).
        m = masks(a.shape[0])
        z = jnp.where(m["top1"], 0.0, lane_roll(a, W))
        u = jnp.maximum(z, lane_roll(z, -1))              # column-pair max
        fin = jnp.maximum(u, lane_roll(u, -W))            # row-pair max
        dec = jnp.concatenate(
            [fin[:, (2 * i) * W:(2 * i + 1) * W] for i in range(H // 2)], axis=1)
        o_ref[...] = dec[:cout].astype(o_ref.dtype)       # (Cout, (H//2)*W)
    else:
        o_ref[...] = a[:cout].astype(o_ref.dtype)         # (Cout, H*W)


# ----------------------------------------------------------------------------
# Wrapper: weight prep (padded, (ky | cout | kx, cin) layout) + pallas_call
# ----------------------------------------------------------------------------
def _prep_weight(w_oihw, cin_pad, cout_pad, dtype):
    o, i, kh, kw = w_oihw.shape
    assert kh == 3 and kw == 3
    w = jnp.transpose(w_oihw, (2, 3, 0, 1))                         # (ky, kx, O, I)
    w = jnp.pad(w, ((0, 0), (0, 0), (0, cout_pad - o), (0, cin_pad - i)))
    w = jnp.transpose(w, (0, 2, 1, 3)).reshape(3, cout_pad, 3 * cin_pad)
    return w.astype(dtype)


def enc_conv_forward(x_nchw, w1_oihw, w2_oihw, w3_oihw, reduce=True,
                     mxu_dtype=jnp.float32):
    N, Cin, H, W = x_nchw.shape
    Cmid = w1_oihw.shape[0]
    Cout = w3_oihw.shape[0]
    assert w1_oihw.shape == (Cmid, Cin, 3, 3)
    assert w2_oihw.shape == (Cmid, Cmid, 3, 3)
    assert w3_oihw.shape == (Cout, Cmid, 3, 3)
    assert W > 0 and (W & (W - 1)) == 0, \
        "in-kernel column masks assume W is a power of two"
    # TODO(synk): for non-power-of-two W pass a precomputed column-index operand.
    if reduce:
        assert H % 2 == 0 and W % 2 == 0, "blind pool expects even H, W"
    HW = H * W

    sub = 8 if jnp.dtype(mxu_dtype) == jnp.dtype(jnp.float32) else 16
    cin_p, cmid_p, cout_p = (_round_up(c, sub) for c in (Cin, Cmid, Cout))

    x_flat = x_nchw.reshape(N, Cin, HW)           # free reshape, lane-dense (C, H*W)
    w1m = _prep_weight(w1_oihw, cin_p, cmid_p, mxu_dtype)    # (3, Cmid_p, 3*Cin_p)
    w2m = _prep_weight(w2_oihw, cmid_p, cmid_p, mxu_dtype)
    w3m = _prep_weight(w3_oihw, cmid_p, cout_p, mxu_dtype)

    HW_out = (H // 2) * W if reduce else HW
    roll_mode = _detect_roll_mode()

    kernel = functools.partial(
        enc_conv_kernel, H=H, W=W, cin_pad=cin_p, cout=Cout,
        reduce=reduce, mxu_dtype=mxu_dtype, roll_mode=roll_mode)

    out_flat = pl.pallas_call(
        kernel,
        out_shape=jax.ShapeDtypeStruct((N, Cout, HW_out), x_nchw.dtype),
        grid_spec=pltpu.PrefetchScalarGridSpec(
            num_scalar_prefetch=0,
            grid=(N,),
            in_specs=[
                pl.BlockSpec((None, Cin, HW), lambda n: (n, 0, 0)),        # one image
                pl.BlockSpec((3, cmid_p, 3 * cin_p), lambda n: (0, 0, 0)),  # w1
                pl.BlockSpec((3, cmid_p, 3 * cmid_p), lambda n: (0, 0, 0)),  # w2
                pl.BlockSpec((3, cout_p, 3 * cmid_p), lambda n: (0, 0, 0)),  # w3
            ],
            out_specs=pl.BlockSpec((None, Cout, HW_out), lambda n: (n, 0, 0)),
        ),
        compiler_params=pltpu.CompilerParams(dimension_semantics=("parallel",)),
    )(x_flat, w1m, w2m, w3m)

    if reduce:
        # Rows were decimated in-kernel; only the stride-2 column decimation remains
        # here (reads/writes 2x less than the previous full-map slice).
        out = out_flat.reshape(N, Cout, H // 2, W)[..., ::2]
    else:
        out = out_flat.reshape(N, Cout, H, W)
    return out


# ----------------------------------------------------------------------------
# Pure-JAX reference (mirrors the PyTorch module) for correctness checking
# ----------------------------------------------------------------------------
def _ref_blind_conv(x_nchw, w_oihw):
    x = jnp.pad(x_nchw, ((0, 0), (0, 0), (1, 0), (0, 0)))             # shift down
    x = jnp.pad(x, ((0, 0), (0, 0), (1, 1), (1, 1)), mode="edge")     # replicate pad 1
    y = lax.conv_general_dilated(x, w_oihw, (1, 1), "VALID",
                                 dimension_numbers=("NCHW", "OIHW", "NCHW"))
    y = jnp.where(y >= 0, y, 0.1 * y)                                 # LeakyReLU(0.1)
    return y[:, :, :-1, :]                                            # crop last row


def _ref_blind_pool(x_nchw):
    N, C, H, W = x_nchw.shape
    x = jnp.pad(x_nchw, ((0, 0), (0, 0), (1, 0), (0, 0)))[:, :, :H, :]
    return lax.reduce_window(x, -jnp.inf, lax.max,
                             (1, 1, 2, 2), (1, 1, 2, 2), "VALID")


def _ref_enc_conv(x_nchw, w1, w2, w3, reduce=True):
    x = _ref_blind_conv(x_nchw, w1)
    x = _ref_blind_conv(x, w2)
    x = _ref_blind_conv(x, w3)
    if reduce:
        x = _ref_blind_pool(x)
    return x


if __name__ == "__main__":
    # Small deterministic setup: in=4, mid=8, out=8, N=2, H=W=16
    Cin, Cmid, Cout = 4, 8, 8
    N, H, W = 2, 16, 16

    key = jax.random.PRNGKey(0)
    k1, k2, k3, kx = jax.random.split(key, 4)
    w1 = jax.random.normal(k1, (Cmid, Cin, 3, 3), jnp.float32) * 0.1
    w2 = jax.random.normal(k2, (Cmid, Cmid, 3, 3), jnp.float32) * 0.1
    w3 = jax.random.normal(k3, (Cout, Cmid, 3, 3), jnp.float32) * 0.1
    x = jax.random.normal(kx, (N, Cin, H, W), jnp.float32)

    # reduce=True (full module: 3 blind convs + blind pool), f32 MXU path
    out = jax.block_until_ready(enc_conv_forward(x, w1, w2, w3, reduce=True))
    ref = jax.block_until_ready(_ref_enc_conv(x, w1, w2, w3, reduce=True))
    assert out.shape == (N, Cout, H // 2, W // 2), out.shape
    assert jnp.allclose(out, ref, rtol=1e-5, atol=1e-5), \
        f"max abs err {float(jnp.max(jnp.abs(out - ref)))}"

    # reduce=False path
    out_nr = jax.block_until_ready(enc_conv_forward(x, w1, w2, w3, reduce=False))
    ref_nr = jax.block_until_ready(_ref_enc_conv(x, w1, w2, w3, reduce=False))
    assert out_nr.shape == (N, Cout, H, W), out_nr.shape
    assert jnp.allclose(out_nr, ref_nr, rtol=1e-5, atol=1e-5), \
        f"max abs err {float(jnp.max(jnp.abs(out_nr - ref_nr)))}"

    # bf16 MXU path (v6e/v7x recommendation) — looser tolerance for bf16 rounding
    out_bf = jax.block_until_ready(
        enc_conv_forward(x, w1, w2, w3, reduce=True, mxu_dtype=jnp.bfloat16))
    assert out_bf.shape == (N, Cout, H // 2, W // 2), out_bf.shape
    assert jnp.allclose(out_bf, ref, rtol=5e-2, atol=5e-2), \
        f"max abs err (bf16) {float(jnp.max(jnp.abs(out_bf - ref)))}"

    print("KERNEL_OK")
</pallas_src>

<mosaic_0001>
module attributes {stable_mosaic.version = 11 : i64} {
  func.func @_roll_probe_kernel(%arg0: memref<8x256xf32, #tpu.memory_space<vmem>>, %arg1: memref<8x256xf32, #tpu.memory_space<vmem>>) attributes {dimension_semantics = [], scalar_prefetch = 0 : i64, scratch_operands = 0 : i64, tpu.core_type = #tpu.core_type<tc>} {
    %c0 = arith.constant 0 : index
    %c0_0 = arith.constant 0 : index
    %0 = vector.load %arg0[%c0, %c0_0] : memref<8x256xf32, #tpu.memory_space<vmem>>, vector<8x256xf32>
    %c3_i32 = arith.constant 3 : i32
    %1 = tpu.dynamic_rotate %0 by %c3_i32 dim 1 : vector<8x256xf32>, i32 -> vector<8x256xf32>
    %c0_1 = arith.constant 0 : index
    %c0_2 = arith.constant 0 : index
    %2 = vector.load %arg1[%c0_1, %c0_2] : memref<8x256xf32, #tpu.memory_space<vmem>>, vector<8x256xf32>
    tpu.vector_store %arg1[%c0_1, %c0_2], %1 {strides = array<i32>} : memref<8x256xf32, #tpu.memory_space<vmem>>, vector<8x256xf32>,
    return
  }
}

module attributes {stable_mosaic.version = 11 : i64} {
  func.func @enc_conv_kernel(%arg0: i32, %arg1: memref<1x4x256xf32, #tpu.memory_space<vmem>>, %arg2: memref<3x8x24xf32, #tpu.memory_space<vmem>>, %arg3: memref<3x8x24xf32, #tpu.memory_space<vmem>>, %arg4: memref<3x8x24xf32, #tpu.memory_space<vmem>>, %arg5: memref<1x8x128xf32, #tpu.memory_space<vmem>>) attributes {dimension_semantics = [#tpu.dimension_semantics<parallel>], iteration_bounds = array<i64: 2>, scalar_prefetch = 0 : i64, scratch_operands = 0 : i64, tpu.core_type = #tpu.core_type<tc>, window_params = [{transform_indices = @transform_0, window_bounds = array<i64: 1, 4, 256>}, {pipeline_mode = #tpu.pipeline_mode<synchronous>, transform_indices = @transform_1, window_bounds = array<i64: 3, 8, 24>}, {pipeline_mode = #tpu.pipeline_mode<synchronous>, transform_indices = @transform_2, window_bounds = array<i64: 3, 8, 24>}, {pipeline_mode = #tpu.pipeline_mode<synchronous>, transform_indices = @transform_3, window_bounds = array<i64: 3, 8, 24>}, {transform_indices = @transform_4, window_bounds = array<i64: 1, 8, 128>}]} {
    %c0 = arith.constant 0 : index
    %c0_0 = arith.constant 0 : index
    %c0_1 = arith.constant 0 : index
    %0 = vector.load %arg1[%c0, %c0_0, %c0_1] : memref<1x4x256xf32, #tpu.memory_space<vmem>>, vector<1x4x256xf32>
    %1 = vector.shape_cast %0 : vector<1x4x256xf32> to vector<4x256xf32>
    %cst = arith.constant 0.000000e+00 : f32
    %2 = vector.broadcast %cst : f32 to vector<4x256xf32>
    %3 = tpu.concatenate %1, %2 in 0 : vector<4x256xf32>, vector<4x256xf32> -> vector<8x256xf32>
    %4 = tpu.iota {dimensions = array<i32: 1>} : vector<8x256xi32>
    %c15_i32 = arith.constant 15 : i32
    %5 = vector.broadcast %c15_i32 : i32 to vector<8x256xi32>
    %6 = arith.andi %4, %5 : vector<8x256xi32>
    %c0_i32 = arith.constant 0 : i32
    %7 = vector.broadcast %c0_i32 : i32 to vector<8x256xi32>
    %8 = arith.cmpi eq, %6, %7 : vector<8x256xi32>
    %c15_i32_2 = arith.constant 15 : i32
    %9 = vector.broadcast %c15_i32_2 : i32 to vector<8x256xi32>
    %10 = arith.cmpi eq, %6, %9 : vector<8x256xi32>
    %c16_i32 = arith.constant 16 : i32
    %11 = vector.broadcast %c16_i32 : i32 to vector<8x256xi32>
    %12 = arith.cmpi slt, %4, %11 : vector<8x256xi32>
    %c32_i32 = arith.constant 32 : i32
    %13 = vector.broadcast %c32_i32 : i32 to vector<8x256xi32>
    %14 = arith.cmpi slt, %4, %13 : vector<8x256xi32>
    %15 = vector.extract_strided_slice %3 {offsets = [0, 224], sizes = [8, 32], strides = [1, 1]} : vector<8x256xf32> to vector<8x32xf32>
    %16 = vector.extract_strided_slice %3 {offsets = [0, 0], sizes = [8, 224], strides = [1, 1]} : vector<8x256xf32> to vector<8x224xf32>
    %17 = tpu.concatenate %15, %16 in 1 : vector<8x32xf32>, vector<8x224xf32> -> vector<8x256xf32>
    %cst_3 = arith.constant 0.000000e+00 : f32
    %18 = vector.broadcast %cst_3 : f32 to vector<8x256xf32>
    %19 = arith.select %14, %18, %17 : vector<8x256xi1>, vector<8x256xf32>
    %20 = vector.extract_strided_slice %19 {offsets = [0, 255], sizes = [8, 1], strides = [1, 1]} : vector<8x256xf32> to vector<8x1xf32>
    %21 = vector.extract_strided_slice %19 {offsets = [0, 0], sizes = [8, 255], strides = [1, 1]} : vector<8x256xf32> to vector<8x255xf32>
    %22 = tpu.concatenate %20, %21 in 1 : vector<8x1xf32>, vector<8x255xf32> -> vector<8x256xf32>
    %23 = arith.select %8, %19, %22 : vector<8x256xi1>, vector<8x256xf32>
    %24 = vector.extract_strided_slice %19 {offsets = [0, 1], sizes = [8, 255], strides = [1, 1]} : vector<8x256xf32> to vector<8x255xf32>
    %25 = vector.extract_strided_slice %19 {offsets = [0, 0], sizes = [8, 1], strides = [1, 1]} : vector<8x256xf32> to vector<8x1xf32>
    %26 = tpu.concatenate %24, %25 in 1 : vector<8x255xf32>, vector<8x1xf32> -> vector<8x256xf32>
    %27 = arith.select %10, %19, %26 : vector<8x256xi1>, vector<8x256xf32>
    %28 = tpu.concatenate %23, %19, %27 in 0 : vector<8x256xf32>, vector<8x256xf32>, vector<8x256xf32> -> vector<24x256xf32>
    %c0_4 = arith.constant 0 : index
    %c0_5 = arith.constant 0 : index
    %c0_6 = arith.constant 0 : index
    %29 = vector.load %arg2[%c0_4, %c0_5, %c0_6] : memref<3x8x24xf32, #tpu.memory_space<vmem>>, vector<1x8x24xf32>
    %30 = vector.shape_cast %29 : vector<1x8x24xf32> to vector<8x24xf32>
    %cst_7 = arith.constant dense<0.000000e+00> : vector<8x256xf32>
    %31 = tpu.matmul %30, %28, %cst_7 {dimension_numbers = #tpu.dot_dimension_numbers<[1], [0], [0], [1], [0, 0, 1, 1], [], []>} : vector<8x24xf32>, vector<24x256xf32>, vector<8x256xf32> -> vector<8x256xf32>
    %32 = vector.extract_strided_slice %3 {offsets = [0, 240], sizes = [8, 16], strides = [1, 1]} : vector<8x256xf32> to vector<8x16xf32>
    %33 = vector.extract_strided_slice %3 {offsets = [0, 0], sizes = [8, 240], strides = [1, 1]} : vector<8x256xf32> to vector<8x240xf32>
    %34 = tpu.concatenate %32, %33 in 1 : vector<8x16xf32>, vector<8x240xf32> -> vector<8x256xf32>
    %cst_8 = arith.constant 0.000000e+00 : f32
    %35 = vector.broadcast %cst_8 : f32 to vector<8x256xf32>
    %36 = arith.select %12, %35, %34 : vector<8x256xi1>, vector<8x256xf32>
    %37 = vector.extract_strided_slice %36 {offsets = [0, 255], sizes = [8, 1], strides = [1, 1]} : vector<8x256xf32> to vector<8x1xf32>
    %38 = vector.extract_strided_slice %36 {offsets = [0, 0], sizes = [8, 255], strides = [1, 1]} : vector<8x256xf32> to vector<8x255xf32>
    %39 = tpu.concatenate %37, %38 in 1 : vector<8x1xf32>, vector<8x255xf32> -> vector<8x256xf32>
    %40 = arith.select %8, %36, %39 : vector<8x256xi1>, vector<8x256xf32>
    %41 = vector.extract_strided_slice %36 {offsets = [0, 1], sizes = [8, 255], strides = [1, 1]} : vector<8x256xf32> to vector<8x255xf32>
    %42 = vector.extract_strided_slice %36 {offsets = [0, 0], sizes = [8, 1], strides = [1, 1]} : vector<8x256xf32> to vector<8x1xf32>
    %43 = tpu.concatenate %41, %42 in 1 : vector<8x255xf32>, vector<8x1xf32> -> vector<8x256xf32>
    %44 = arith.select %10, %36, %43 : vector<8x256xi1>, vector<8x256xf32>
    %45 = tpu.concatenate %40, %36, %44 in 0 : vector<8x256xf32>, vector<8x256xf32>, vector<8x256xf32> -> vector<24x256xf32>
    %c1 = arith.constant 1 : index
    %c0_9 = arith.constant 0 : index
    %c0_10 = arith.constant 0 : index
    %46 = vector.load %arg2[%c1, %c0_9, %c0_10] : memref<3x8x24xf32, #tpu.memory_space<vmem>>, vector<1x8x24xf32>
    %47 = vector.shape_cast %46 : vector<1x8x24xf32> to vector<8x24xf32>
    %cst_11 = arith.constant dense<0.000000e+00> : vector<8x256xf32>
    %48 = tpu.matmul %47, %45, %cst_11 {dimension_numbers = #tpu.dot_dimension_numbers<[1], [0], [0], [1], [0, 0, 1, 1], [], []>} : vector<8x24xf32>, vector<24x256xf32>, vector<8x256xf32> -> vector<8x256xf32>
    %49 = arith.addf %31, %48 : vector<8x256xf32>
    %50 = vector.extract_strided_slice %3 {offsets = [0, 255], sizes = [8, 1], strides = [1, 1]} : vector<8x256xf32> to vector<8x1xf32>
    %51 = vector.extract_strided_slice %3 {offsets = [0, 0], sizes = [8, 255], strides = [1, 1]} : vector<8x256xf32> to vector<8x255xf32>
    %52 = tpu.concatenate %50, %51 in 1 : vector<8x1xf32>, vector<8x255xf32> -> vector<8x256xf32>
    %53 = arith.select %8, %3, %52 : vector<8x256xi1>, vector<8x256xf32>
    %54 = vector.extract_strided_slice %3 {offsets = [0, 1], sizes = [8, 255], strides = [1, 1]} : vector<8x256xf32> to vector<8x255xf32>
    %55 = vector.extract_strided_slice %3 {offsets = [0, 0], sizes = [8, 1], strides = [1, 1]} : vector<8x256xf32> to vector<8x1xf32>
    %56 = tpu.concatenate %54, %55 in 1 : vector<8x255xf32>, vector<8x1xf32> -> vector<8x256xf32>
    %57 = arith.select %10, %3, %56 : vector<8x256xi1>, vector<8x256xf32>
    %58 = tpu.concatenate %53, %3, %57 in 0 : vector<8x256xf32>, vector<8x256xf32>, vector<8x256xf32> -> vector<24x256xf32>
    %c2 = arith.constant 2 : index
    %c0_12 = arith.constant 0 : index
    %c0_13 = arith.constant 0 : index
    %59 = vector.load %arg2[%c2, %c0_12, %c0_13] : memref<3x8x24xf32, #tpu.memory_space<vmem>>, vector<1x8x24xf32>
    %60 = vector.shape_cast %59 : vector<1x8x24xf32> to vector<8x24xf32>
    %cst_14 = arith.constant dense<0.000000e+00> : vector<8x256xf32>
    %61 = tpu.matmul %60, %58, %cst_14 {dimension_numbers = #tpu.dot_dimension_numbers<[1], [0], [0], [1], [0, 0, 1, 1], [], []>} : vector<8x24xf32>, vector<24x256xf32>, vector<8x256xf32> -> vector<8x256xf32>
    %62 = arith.addf %49, %61 : vector<8x256xf32>
    %cst_15 = arith.constant 1.000000e-01 : f32
    %63 = vector.broadcast %cst_15 : f32 to vector<8x256xf32>
    %64 = arith.mulf %63, %62 : vector<8x256xf32>
    %65 = arith.maximumf %62, %64 : vector<8x256xf32>
    %66 = vector.extract_strided_slice %65 {offsets = [0, 224], sizes = [8, 32], strides = [1, 1]} : vector<8x256xf32> to vector<8x32xf32>
    %67 = vector.extract_strided_slice %65 {offsets = [0, 0], sizes = [8, 224], strides = [1, 1]} : vector<8x256xf32> to vector<8x224xf32>
    %68 = tpu.concatenate %66, %67 in 1 : vector<8x32xf32>, vector<8x224xf32> -> vector<8x256xf32>
    %cst_16 = arith.constant 0.000000e+00 : f32
    %69 = vector.broadcast %cst_16 : f32 to vector<8x256xf32>
    %70 = arith.select %14, %69, %68 : vector<8x256xi1>, vector<8x256xf32>
    %71 = vector.extract_strided_slice %70 {offsets = [0, 255], sizes = [8, 1], strides = [1, 1]} : vector<8x256xf32> to vector<8x1xf32>
    %72 = vector.extract_strided_slice %70 {offsets = [0, 0], sizes = [8, 255], strides = [1, 1]} : vector<8x256xf32> to vector<8x255xf32>
    %73 = tpu.concatenate %71, %72 in 1 : vector<8x1xf32>, vector<8x255xf32> -> vector<8x256xf32>
    %74 = arith.select %8, %70, %73 : vector<8x256xi1>, vector<8x256xf32>
    %75 = vector.extract_strided_slice %70 {offsets = [0, 1], sizes = [8, 255], strides = [1, 1]} : vector<8x256xf32> to vector<8x255xf32>
    %76 = vector.extract_strided_slice %70 {offsets = [0, 0], sizes = [8, 1], strides = [1, 1]} : vector<8x256xf32> to vector<8x1xf32>
    %77 = tpu.concatenate %75, %76 in 1 : vector<8x255xf32>, vector<8x1xf32> -> vector<8x256xf32>
    %78 = arith.select %10, %70, %77 : vector<8x256xi1>, vector<8x256xf32>
    %79 = tpu.concatenate %74, %70, %78 in 0 : vector<8x256xf32>, vector<8x256xf32>, vector<8x256xf32> -> vector<24x256xf32>
    %c0_17 = arith.constant 0 : index
    %c0_18 = arith.constant 0 : index
    %c0_19 = arith.constant 0 : index
    %80 = vector.load %arg3[%c0_17, %c0_18, %c0_19] : memref<3x8x24xf32, #tpu.memory_space<vmem>>, vector<1x8x24xf32>
    %81 = vector.shape_cast %80 : vector<1x8x24xf32> to vector<8x24xf32>
    %cst_20 = arith.constant dense<0.000000e+00> : vector<8x256xf32>
    %82 = tpu.matmul %81, %79, %cst_20 {dimension_numbers = #tpu.dot_dimension_numbers<[1], [0], [0], [1], [0, 0, 1, 1], [], []>} : vector<8x24xf32>, vector<24x256xf32>, vector<8x256xf32> -> vector<8x256xf32>
    %83 = vector.extract_strided_slice %65 {offsets = [0, 240], sizes = [8, 16], strides = [1, 1]} : vector<8x256xf32> to vector<8x16xf32>
    %84 = vector.extract_strided_slice %65 {offsets = [0, 0], sizes = [8, 240], strides = [1, 1]} : vector<8x256xf32> to vector<8x240xf32>
    %85 = tpu.concatenate %83, %84 in 1 : vector<8x16xf32>, vector<8x240xf32> -> vector<8x256xf32>
    %cst_21 = arith.constant 0.000000e+00 : f32
    %86 = vector.broadcast %cst_21 : f32 to vector<8x256xf32>
    %87 = arith.select %12, %86, %85 : vector<8x256xi1>, vector<8x256xf32>
    %88 = vector.extract_strided_slice %87 {offsets = [0, 255], sizes = [8, 1], strides = [1, 1]} : vector<8x256xf32> to vector<8x1xf32>
    %89 = vector.extract_strided_slice %87 {offsets = [0, 0], sizes = [8, 255], strides = [1, 1]} : vector<8x256xf32> to vector<8x255xf32>
    %90 = tpu.concatenate %88, %89 in 1 : vector<8x1xf32>, vector<8x255xf32> -> vector<8x256xf32>
    %91 = arith.select %8, %87, %90 : vector<8x256xi1>, vector<8x256xf32>
    %92 = vector.extract_strided_slice %87 {offsets = [0, 1], sizes = [8, 255], strides = [1, 1]} : vector<8x256xf32> to vector<8x255xf32>
    %93 = vector.extract_strided_slice %87 {offsets = [0, 0], sizes = [8, 1], strides = [1, 1]} : vector<8x256xf32> to vector<8x1xf32>
    %94 = tpu.concatenate %92, %93 in 1 : vector<8x255xf32>, vector<8x1xf32> -> vector<8x256xf32>
    %95 = arith.select %10, %87, %94 : vector<8x256xi1>, vector<8x256xf32>
    %96 = tpu.concatenate %91, %87, %95 in 0 : vector<8x256xf32>, vector<8x256xf32>, vector<8x256xf32> -> vector<24x256xf32>
    %c1_22 = arith.constant 1 : index
    %c0_23 = arith.constant 0 : index
    %c0_24 = arith.constant 0 : index
    %97 = vector.load %arg3[%c1_22, %c0_23, %c0_24] : memref<3x8x24xf32, #tpu.memory_space<vmem>>, vector<1x8x24xf32>
    %98 = vector.shape_cast %97 : vector<1x8x24xf32> to vector<8x24xf32>
    %cst_25 = arith.constant dense<0.000000e+00> : vector<8x256xf32>
    %99 = tpu.matmul %98, %96, %cst_25 {dimension_numbers = #tpu.dot_dimension_numbers<[1], [0], [0], [1], [0, 0, 1, 1], [], []>} : vector<8x24xf32>, vector<24x256xf32>, vector<8x256xf32> -> vector<8x256xf32>
    %100 = arith.addf %82, %99 : vector<8x256xf32>
    %101 = vector.extract_strided_slice %65 {offsets = [0, 255], sizes = [8, 1], strides = [1, 1]} : vector<8x256xf32> to vector<8x1xf32>
    %102 = vector.extract_strided_slice %65 {offsets = [0, 0], sizes = [8, 255], strides = [1, 1]} : vector<8x256xf32> to vector<8x255xf32>
    %103 = tpu.concatenate %101, %102 in 1 : vector<8x1xf32>, vector<8x255xf32> -> vector<8x256xf32>
    %104 = arith.select %8, %65, %103 : vector<8x256xi1>, vector<8x256xf32>
    %105 = vector.extract_strided_slice %65 {offsets = [0, 1], sizes = [8, 255], strides = [1, 1]} : vector<8x256xf32> to vector<8x255xf32>
    %106 = vector.extract_strided_slice %65 {offsets = [0, 0], sizes = [8, 1], strides = [1, 1]} : vector<8x256xf32> to vector<8x1xf32>
    %107 = tpu.concatenate %105, %106 in 1 : vector<8x255xf32>, vector<8x1xf32> -> vector<8x256xf32>
    %108 = arith.select %10, %65, %107 : vector<8x256xi1>, vector<8x256xf32>
    %109 = tpu.concatenate %104, %65, %108 in 0 : vector<8x256xf32>, vector<8x256xf32>, vector<8x256xf32> -> vector<24x256xf32>
    %c2_26 = arith.constant 2 : index
    %c0_27 = arith.constant 0 : index
    %c0_28 = arith.constant 0 : index
    %110 = vector.load %arg3[%c2_26, %c0_27, %c0_28] : memref<3x8x24xf32, #tpu.memory_space<vmem>>, vector<1x8x24xf32>
    %111 = vector.shape_cast %110 : vector<1x8x24xf32> to vector<8x24xf32>
    %cst_29 = arith.constant dense<0.000000e+00> : vector<8x256xf32>
    %112 = tpu.matmul %111, %109, %cst_29 {dimension_numbers = #tpu.dot_dimension_numbers<[1], [0], [0], [1], [0, 0, 1, 1], [], []>} : vector<8x24xf32>, vector<24x256xf32>, vector<8x256xf32> -> vector<8x256xf32>
    %113 = arith.addf %100, %112 : vector<8x256xf32>
    %cst_30 = arith.constant 1.000000e-01 : f32
    %114 = vector.broadcast %cst_30 : f32 to vector<8x256xf32>
    %115 = arith.mulf %114, %113 : vector<8x256xf32>
    %116 = arith.maximumf %113, %115 : vector<8x256xf32>
    %117 = vector.extract_strided_slice %116 {offsets = [0, 224], sizes = [8, 32], strides = [1, 1]} : vector<8x256xf32> to vector<8x32xf32>
    %118 = vector.extract_strided_slice %116 {offsets = [0, 0], sizes = [8, 224], strides = [1, 1]} : vector<8x256xf32> to vector<8x224xf32>
    %119 = tpu.concatenate %117, %118 in 1 : vector<8x32xf32>, vector<8x224xf32> -> vector<8x256xf32>
    %cst_31 = arith.constant 0.000000e+00 : f32
    %120 = vector.broadcast %cst_31 : f32 to vector<8x256xf32>
    %121 = arith.select %14, %120, %119 : vector<8x256xi1>, vector<8x256xf32>
    %122 = vector.extract_strided_slice %121 {offsets = [0, 255], sizes = [8, 1], strides = [1, 1]} : vector<8x256xf32> to vector<8x1xf32>
    %123 = vector.extract_strided_slice %121 {offsets = [0, 0], sizes = [8, 255], strides = [1, 1]} : vector<8x256xf32> to vector<8x255xf32>
    %124 = tpu.concatenate %122, %123 in 1 : vector<8x1xf32>, vector<8x255xf32> -> vector<8x256xf32>
    %125 = arith.select %8, %121, %124 : vector<8x256xi1>, vector<8x256xf32>
    %126 = vector.extract_strided_slice %121 {offsets = [0, 1], sizes = [8, 255], strides = [1, 1]} : vector<8x256xf32> to vector<8x255xf32>
    %127 = vector.extract_strided_slice %121 {offsets = [0, 0], sizes = [8, 1], strides = [1, 1]} : vector<8x256xf32> to vector<8x1xf32>
    %128 = tpu.concatenate %126, %127 in 1 : vector<8x255xf32>, vector<8x1xf32> -> vector<8x256xf32>
    %129 = arith.select %10, %121, %128 : vector<8x256xi1>, vector<8x256xf32>
    %130 = tpu.concatenate %125, %121, %129 in 0 : vector<8x256xf32>, vector<8x256xf32>, vector<8x256xf32> -> vector<24x256xf32>
    %c0_32 = arith.constant 0 : index
    %c0_33 = arith.constant 0 : index
    %c0_34 = arith.constant 0 : index
    %131 = vector.load %arg4[%c0_32, %c0_33, %c0_34] : memref<3x8x24xf32, #tpu.memory_space<vmem>>, vector<1x8x24xf32>
    %132 = vector.shape_cast %131 : vector<1x8x24xf32> to vector<8x24xf32>
    %cst_35 = arith.constant dense<0.000000e+00> : vector<8x256xf32>
    %133 = tpu.matmul %132, %130, %cst_35 {dimension_numbers = #tpu.dot_dimension_numbers<[1], [0], [0], [1], [0, 0, 1, 1], [], []>} : vector<8x24xf32>, vector<24x256xf32>, vector<8x256xf32> -> vector<8x256xf32>
    %134 = vector.extract_strided_slice %116 {offsets = [0, 240], sizes = [8, 16], strides = [1, 1]} : vector<8x256xf32> to vector<8x16xf32>
    %135 = vector.extract_strided_slice %116 {offsets = [0, 0], sizes = [8, 240], strides = [1, 1]} : vector<8x256xf32> to vector<8x240xf32>
    %136 = tpu.concatenate %134, %135 in 1 : vector<8x16xf32>, vector<8x240xf32> -> vector<8x256xf32>
    %cst_36 = arith.constant 0.000000e+00 : f32
    %137 = vector.broadcast %cst_36 : f32 to vector<8x256xf32>
    %138 = arith.select %12, %137, %136 : vector<8x256xi1>, vector<8x256xf32>
    %139 = vector.extract_strided_slice %138 {offsets = [0, 255], sizes = [8, 1], strides = [1, 1]} : vector<8x256xf32> to vector<8x1xf32>
    %140 = vector.extract_strided_slice %138 {offsets = [0, 0], sizes = [8, 255], strides = [1, 1]} : vector<8x256xf32> to vector<8x255xf32>
    %141 = tpu.concatenate %139, %140 in 1 : vector<8x1xf32>, vector<8x255xf32> -> vector<8x256xf32>
    %142 = arith.select %8, %138, %141 : vector<8x256xi1>, vector<8x256xf32>
    %143 = vector.extract_strided_slice %138 {offsets = [0, 1], sizes = [8, 255], strides = [1, 1]} : vector<8x256xf32> to vector<8x255xf32>
    %144 = vector.extract_strided_slice %138 {offsets = [0, 0], sizes = [8, 1], strides = [1, 1]} : vector<8x256xf32> to vector<8x1xf32>
    %145 = tpu.concatenate %143, %144 in 1 : vector<8x255xf32>, vector<8x1xf32> -> vector<8x256xf32>
    %146 = arith.select %10, %138, %145 : vector<8x256xi1>, vector<8x256xf32>
    %147 = tpu.concatenate %142, %138, %146 in 0 : vector<8x256xf32>, vector<8x256xf32>, vector<8x256xf32> -> vector<24x256xf32>
    %c1_37 = arith.constant 1 : index
    %c0_38 = arith.constant 0 : index
    %c0_39 = arith.constant 0 : index
    %148 = vector.load %arg4[%c1_37, %c0_38, %c0_39] : memref<3x8x24xf32, #tpu.memory_space<vmem>>, vector<1x8x24xf32>
    %149 = vector.shape_cast %148 : vector<1x8x24xf32> to vector<8x24xf32>
    %cst_40 = arith.constant dense<0.000000e+00> : vector<8x256xf32>
    %150 = tpu.matmul %149, %147, %cst_40 {dimension_numbers = #tpu.dot_dimension_numbers<[1], [0], [0], [1], [0, 0, 1, 1], [], []>} : vector<8x24xf32>, vector<24x256xf32>, vector<8x256xf32> -> vector<8x256xf32>
    %151 = arith.addf %133, %150 : vector<8x256xf32>
    %152 = vector.extract_strided_slice %116 {offsets = [0, 255], sizes = [8, 1], strides = [1, 1]} : vector<8x256xf32> to vector<8x1xf32>
    %153 = vector.extract_strided_slice %116 {offsets = [0, 0], sizes = [8, 255], strides = [1, 1]} : vector<8x256xf32> to vector<8x255xf32>
    %154 = tpu.concatenate %152, %153 in 1 : vector<8x1xf32>, vector<8x255xf32> -> vector<8x256xf32>
    %155 = arith.select %8, %116, %154 : vector<8x256xi1>, vector<8x256xf32>
    %156 = vector.extract_strided_slice %116 {offsets = [0, 1], sizes = [8, 255], strides = [1, 1]} : vector<8x256xf32> to vector<8x255xf32>
    %157 = vector.extract_strided_slice %116 {offsets = [0, 0], sizes = [8, 1], strides = [1, 1]} : vector<8x256xf32> to vector<8x1xf32>
    %158 = tpu.concatenate %156, %157 in 1 : vector<8x255xf32>, vector<8x1xf32> -> vector<8x256xf32>
    %159 = arith.select %10, %116, %158 : vector<8x256xi1>, vector<8x256xf32>
    %160 = tpu.concatenate %155, %116, %159 in 0 : vector<8x256xf32>, vector<8x256xf32>, vector<8x256xf32> -> vector<24x256xf32>
    %c2_41 = arith.constant 2 : index
    %c0_42 = arith.constant 0 : index
    %c0_43 = arith.constant 0 : index
    %161 = vector.load %arg4[%c2_41, %c0_42, %c0_43] : memref<3x8x24xf32, #tpu.memory_space<vmem>>, vector<1x8x24xf32>
    %162 = vector.shape_cast %161 : vector<1x8x24xf32> to vector<8x24xf32>
    %cst_44 = arith.constant dense<0.000000e+00> : vector<8x256xf32>
    %163 = tpu.matmul %162, %160, %cst_44 {dimension_numbers = #tpu.dot_dimension_numbers<[1], [0], [0], [1], [0, 0, 1, 1], [], []>} : vector<8x24xf32>, vector<24x256xf32>, vector<8x256xf32> -> vector<8x256xf32>
    %164 = arith.addf %151, %163 : vector<8x256xf32>
    %cst_45 = arith.constant 1.000000e-01 : f32
    %165 = vector.broadcast %cst_45 : f32 to vector<8x256xf32>
    %166 = arith.mulf %165, %164 : vector<8x256xf32>
    %167 = arith.maximumf %164, %166 : vector<8x256xf32>
    %168 = vector.extract_strided_slice %167 {offsets = [0, 240], sizes = [8, 16], strides = [1, 1]} : vector<8x256xf32> to vector<8x16xf32>
    %169 = vector.extract_strided_slice %167 {offsets = [0, 0], sizes = [8, 240], strides = [1, 1]} : vector<8x256xf32> to vector<8x240xf32>
    %170 = tpu.concatenate %168, %169 in 1 : vector<8x16xf32>, vector<8x240xf32> -> vector<8x256xf32>
    %cst_46 = arith.constant 0.000000e+00 : f32
    %171 = vector.broadcast %cst_46 : f32 to vector<8x256xf32>
    %172 = arith.select %12, %171, %170 : vector<8x256xi1>, vector<8x256xf32>
    %173 = vector.extract_strided_slice %172 {offsets = [0, 1], sizes = [8, 255], strides = [1, 1]} : vector<8x256xf32> to vector<8x255xf32>
    %174 = vector.extract_strided_slice %172 {offsets = [0, 0], sizes = [8, 1], strides = [1, 1]} : vector<8x256xf32> to vector<8x1xf32>
    %175 = tpu.concatenate %173, %174 in 1 : vector<8x255xf32>, vector<8x1xf32> -> vector<8x256xf32>
    %176 = arith.maximumf %172, %175 : vector<8x256xf32>
    %177 = vector.extract_strided_slice %176 {offsets = [0, 16], sizes = [8, 240], strides = [1, 1]} : vector<8x256xf32> to vector<8x240xf32>
    %178 = vector.extract_strided_slice %176 {offsets = [0, 0], sizes = [8, 16], strides = [1, 1]} : vector<8x256xf32> to vector<8x16xf32>
    %179 = tpu.concatenate %177, %178 in 1 : vector<8x240xf32>, vector<8x16xf32> -> vector<8x256xf32>
    %180 = arith.maximumf %176, %179 : vector<8x256xf32>
    %181 = vector.extract_strided_slice %180 {offsets = [0, 0], sizes = [8, 16], strides = [1, 1]} : vector<8x256xf32> to vector<8x16xf32>
    %182 = vector.extract_strided_slice %180 {offsets = [0, 32], sizes = [8, 16], strides = [1, 1]} : vector<8x256xf32> to vector<8x16xf32>
    %183 = vector.extract_strided_slice %180 {offsets = [0, 64], sizes = [8, 16], strides = [1, 1]} : vector<8x256xf32> to vector<8x16xf32>
    %184 = vector.extract_strided_slice %180 {offsets = [0, 96], sizes = [8, 16], strides = [1, 1]} : vector<8x256xf32> to vector<8x16xf32>
    %185 = vector.extract_strided_slice %180 {offsets = [0, 128], sizes = [8, 16], strides = [1, 1]} : vector<8x256xf32> to vector<8x16xf32>
    %186 = vector.extract_strided_slice %180 {offsets = [0, 160], sizes = [8, 16], strides = [1, 1]} : vector<8x256xf32> to vector<8x16xf32>
    %187 = vector.extract_strided_slice %180 {offsets = [0, 192], sizes = [8, 16], strides = [1, 1]} : vector<8x256xf32> to vector<8x16xf32>
    %188 = vector.extract_strided_slice %180 {offsets = [0, 224], sizes = [8, 16], strides = [1, 1]} : vector<8x256xf32> to vector<8x16xf32>
    %189 = tpu.concatenate %181, %182, %183, %184, %185, %186, %187, %188 in 1 : vector<8x16xf32>, vector<8x16xf32>, vector<8x16xf32>, vector<8x16xf32>, vector<8x16xf32>, vector<8x16xf32>, vector<8x16xf32>, vector<8x16xf32> -> vector<8x128xf32>
    %c0_47 = arith.constant 0 : index
    %c0_48 = arith.constant 0 : index
    %c0_49 = arith.constant 0 : index
    %190 = vector.load %arg5[%c0_47, %c0_48, %c0_49] : memref<1x8x128xf32, #tpu.memory_space<vmem>>, vector<1x8x128xf32>
    %191 = vector.shape_cast %190 : vector<1x8x128xf32> to vector<8x128xf32>
    %192 = vector.shape_cast %189 : vector<8x128xf32> to vector<1x8x128xf32>
    tpu.vector_store %arg5[%c0_47, %c0_48, %c0_49], %192 {strides = array<i32>} : memref<1x8x128xf32, #tpu.memory_space<vmem>>, vector<1x8x128xf32>,
    return
  }
  func.func @transform_0(%arg0: i32) -> (i32, i32, i32) {
    %c0_i32 = arith.constant 0 : i32
    %c0_i32_0 = arith.constant 0 : i32
    %c0_i32_1 = arith.constant 0 : i32
    return %arg0, %c0_i32, %c0_i32_0 : i32, i32, i32
  }
  func.func @transform_1(%arg0: i32) -> (i32, i32, i32) {
    %c0_i32 = arith.constant 0 : i32
    %c0_i32_0 = arith.constant 0 : i32
    %c0_i32_1 = arith.constant 0 : i32
    %c0_i32_2 = arith.constant 0 : i32
    return %c0_i32, %c0_i32_0, %c0_i32_1 : i32, i32, i32
  }
  func.func @transform_2(%arg0: i32) -> (i32, i32, i32) {
    %c0_i32 = arith.constant 0 : i32
    %c0_i32_0 = arith.constant 0 : i32
    %c0_i32_1 = arith.constant 0 : i32
    %c0_i32_2 = arith.constant 0 : i32
    return %c0_i32, %c0_i32_0, %c0_i32_1 : i32, i32, i32
  }
  func.func @transform_3(%arg0: i32) -> (i32, i32, i32) {
    %c0_i32 = arith.constant 0 : i32
    %c0_i32_0 = arith.constant 0 : i32
    %c0_i32_1 = arith.constant 0 : i32
    %c0_i32_2 = arith.constant 0 : i32
    return %c0_i32, %c0_i32_0, %c0_i32_1 : i32, i32, i32
  }
  func.func @transform_4(%arg0: i32) -> (i32, i32, i32) {
    %c0_i32 = arith.constant 0 : i32
    %c0_i32_0 = arith.constant 0 : i32
    %c0_i32_1 = arith.constant 0 : i32
    return %arg0, %c0_i32, %c0_i32_0 : i32, i32, i32
  }
}

</mosaic_0001>

<bundles_post_ra>
// kernel: tpu_custom_call.1
= control target key start
LH: loop header
LB: loop body
LE: loop exit
PB: predicated region body
PF: predicated region fallthrough
CT: control target
= control target key end

     0   :  { %6 = vsyncpa [#allocation3], 0  ;;  %s137_s0 = inlined_call_operand.hbm [shape: f32[8,256], index: 0, kind: input, shape index: {}]   ;;  %s138_s1 = inlined_call_operand.hbm [shape: f32[8,256], index: 1, kind: output, shape index: {}]  }
   0x1   :  { %7 = vsyncpa [#allocation4], 0  ;;  %s100_s6 = smov [#allocation2]   ;;  %s52_s10 = scalar_lea.hbm %s137_s0, 256 }
   0x2   :  { %s14_s7 = sshll.u32 %s100_s6, 4  ;;  %p53_p0 = scmp.ne.s32.totalorder %s137_s0, %s52_s10  ;;  %s15_s7 = int_to_ptr.vmem [resolvable:$true] %s14_s7 }
   0x3   :  { %p56_p1 = scmp.lt.u32.totalorder %s52_s10, %s137_s0 }
   0x5   :  { %p58_p2 = pnand %p56_p1, %p53_p0 }
   0x7   :  { %61 = shalt.err (!%p58_p2)
}
   0x8   :  { %s62_s15 = scalar_lea.vmem %s15_s7, 256  ;;  %p67_p4 = scmp.lt.s32.totalorder %s15_s7, %s15_s7 }
   0x9   :  { %p63_p3 = scmp.ne.s32.totalorder %s15_s7, %s62_s15  ;;  %p68_p5 = scmp.lt.s32.totalorder %s62_s15, %s62_s15 }
   0xb   :  { %p69_p6 = por %p68_p5, %p67_p4 }
   0xd   :  { %p70_p7 = pnand %p69_p6, %p63_p3 }
   0xf   :  { %73 = shalt.err (!%p70_p7)
}
  0x10   :  { %17 = dma.hbm_to_vmem [thread:$0]  %s137_s0, 256, %s15_s7, [#allocation3]  }
  0x11   :  { %96 = dma.done.wait [#allocation3], 256  }
  0x12   :  { %97 = vsyncadd [#allocation3], 4294967040  ;;  %v21_v0 = vld [vmem:[#allocation2] sm:$0xff]  ;;  %s101_s18 = smov 3   ;;  %v22_v1 = vld [vmem:[#allocation2 + $0x8] sm:$0xff]  ;;  %v27_v2 = vlaneseq  ;;  %s102_s19 = smov [#allocation5]  }
  0x13   :  { %23 = vrot.lane.b32.xlu0 %v21_v0, %s101_s18  ;;  %s40_s20 = sshll.u32 %s102_s19, 4  ;;  %s41_s20 = int_to_ptr.vmem [resolvable:$true] %s40_s20 }
  0x14   :  { %v28_v3 = vand.u32 127, %v27_v2  ;;  %s74_s0 = scalar_lea.vmem %s41_s20, 256  ;;  %p79_p9 = scmp.lt.s32.totalorder %s41_s20, %s41_s20 }
  0x15   :  { %p75_p8 = scmp.ne.s32.totalorder %s41_s20, %s74_s0  ;;  %p80_p10 = scmp.lt.s32.totalorder %s74_s0, %s74_s0 }
  0x16   :  { %vm29_vm0 = vcmp.lt.s32.totalorder %v28_v3, 3 }
  0x17   :  { %25 = vrot.lane.b32.xlu0 %v22_v1, %s101_s18  ;;  %p81_p11 = por %p80_p10, %p79_p9 }
  0x19   :  { %p82_p12 = pnand %p81_p11, %p75_p8 }
  0x85   :  { %v24_v4 = vpop.permute.xlu0 %23 }
  0x89   :  { %v26_v5 = vpop.permute.xlu0 %25 }
  0x8a   :  { %v30_v6 = vsel %vm29_vm0, %v24_v4, %v26_v5  ;;  %v31_v7 = vsel %vm29_vm0, %v26_v5, %v24_v4 }
  0x8b   :  { %32 = vst [vmem:[#allocation5] sm:$0xff] %v31_v7  ;;  %33 = vst [vmem:[#allocation5 + $0x8] sm:$0xff] %v30_v6 }
  0x8c   :  { %85 = shalt.err (!%p82_p12)
}
  0x8d   :  { %s86_s23 = scalar_lea.hbm %s138_s1, 256 }
  0x8e   :  { %p87_p13 = scmp.ne.s32.totalorder %s138_s1, %s86_s23  ;;  %p90_p0 = scmp.lt.u32.totalorder %s86_s23, %s138_s1 }
  0x90   :  { %p92_p1 = pnand %p90_p0, %p87_p13 }
  0x92   :  { %95 = shalt.err (!%p92_p1)
}
  0x93   :  { %43 = dma.vmem_to_hbm [thread:$0]  %s41_s20, 256, %s138_s1, [#allocation4]  }
  0x94   :  { %98 = dma.done.wait [#allocation4], 256  }
  0x95   :  { %99 = vsyncadd [#allocation4], 4294967040 }
  0x96   :  { %47 = vsyncpa [#allocation3], 1 }
  0x97   :  { %48 = vsyncpa [#allocation4], 1 }

// kernel: tpu_custom_call.1
= control target key start
LH: loop header
LB: loop body
LE: loop exit
PB: predicated region body
PF: predicated region fallthrough
CT: control target
= control target key end

     0   :  { %9 = vsyncpa [#allocation3], 0  ;;  %s2533_s0 = inlined_call_operand.hbm [shape: f32[2,4,256], index: 0, kind: input, shape index: {}]   ;;  %s2534_s1 = inlined_call_operand.hbm [shape: f32[3,8,24], index: 1, kind: input, shape index: {}]   ;;  %s2535_s2 = inlined_call_operand.hbm [shape: f32[3,8,24], index: 2, kind: input, shape index: {}]   ;;  %s2536_s3 = inlined_call_operand.hbm [shape: f32[3,8,24], index: 3, kind: input, shape index: {}]   ;;  %s2537_s4 = inlined_call_operand.hbm [shape: f32[2,8,128], index: 4, kind: output, shape index: {}]  }
   0x1   :  { %11 = vsyncpa [#allocation3 + $0x1], 0 }
   0x2   :  { %12 = vsyncpa [#allocation6], 0 }
   0x3   :  { %13 = vsyncpa [#allocation9], 0 }
   0x4   :  { %14 = vsyncpa [#allocation4], 0 }
   0x5   :  { %16 = vsyncpa [#allocation4 + $0x1], 0  ;;  %s1920_s15 = smov 0   ;;  %s1922_s16 = smov 0  }
   0x6   :  { %s1924_s17 = smov 0   ;;  %s1926_s18 = smov 0  }
   0x7 LB: > { %s1941_s19 = sadd.s32 4294967295, %s1875_s18   ;;  %s1452_s20 = sadd.s32 4294967294, %s1875_s18   ;;  %s1875_s18 = sphi %s1926_s18, %s2572_s18   ;;  %s1871_s17 = sphi %s1924_s17, %s2571_s17   ;;  %s1867_s16 = sphi %s1922_s16, %s2570_s16   ;;  %s1863_s15 = sphi %s1920_s15, %s2569_s15  }
   0x8   : > { %p42_p0 = scmp.ne.s32.totalorder %s1867_s16, %s1863_s15  ;;  %p2538_p1 = scmp.eq.s32.totalorder %s1941_s19, 0 }
   0x9   : > { %p135_p3 = scmp.eq.s32.totalorder %s1452_s20, 1  ;;  %p1453_p5 = scmp.ge.s32.totalorder %s1875_s18, 1 }
   0xa   : > { %p1950_p4 = por %p2538_p1, %p42_p0  ;;  %p142_p7 = scmp.lt.s32.totalorder %s1875_s18, 3 }
   0xb   : > { %p1955_p6 = por %p135_p3, %p42_p0  ;;  %s1877_s24 = smov [#allocation5]  }
   0xc   : > { %s2541_s21 = scalar_select %p1950_p4, 1, 0 }
   0xd   : > { %s2542_s22 = scalar_select %p1955_p6, 1, 0 }
   0xe   : > { %p1960_p8 = pnand %p1453_p5, %p142_p7  ;;  %s154_s25 = sshll.u32 %s1877_s24, 4  ;;  %s1964_s25 = int_to_ptr.vmem [resolvable:$true] %s154_s25 }
   0xf   : > { %s1878_s27 = smov [#allocation7]   ;;  %s1879_s29 = smov [#allocation8]  }
  0x10   : > { %s2543_s23 = scalar_select %p1960_p8, 1, 0 }
  0x11   : > { %p1567_p9 = pneg %p1960_p8  ;;  %s167_s28 = sshll.u32 %s1878_s27, 4  ;;  %s1975_s28 = int_to_ptr.vmem [resolvable:$true] %s167_s28 }
  0x12   : > { %s1977_s30 = sshll.u32 %s1879_s29, 4  ;;  %s1687_s7 = scalar_lea.hbm %s2534_s1, 384  ;;  %s181_s30 = int_to_ptr.vmem [resolvable:$true] %s1977_s30 }
  0x13   : > { %p1971_p11 = pnand %p1567_p9, %p2538_p1  ;;  %p1688_p12 = scmp.ne.s32.totalorder %s2534_s1, %s1687_s7 }
  0x14   : > { %p1694_p5 = scmp.lt.u32.totalorder %s1687_s7, %s2534_s1 }
  0x15   : > { %p1987_p13 = pneg %p1971_p11 }
  0x17   : > { %p1690_p0 = pnand %p1987_p13, %p1688_p12 }
  0x19   : > { %p1691_p3 = pneg %p1690_p0 }
  0x1b   : > { %p1696_p7 = pnand %p1694_p5, %p1691_p3 }
  0x1d   : > { %1699 = shalt.err (!%p1696_p7)
}
  0x1e   : > { %s1700_s13 = scalar_lea.vmem %s1964_s25, 384  ;;  %p1708_p2 = scmp.lt.s32.totalorder %s1964_s25, %s1964_s25 }
  0x1f   : > { %p1701_p9 = scmp.ne.s32.totalorder %s1964_s25, %s1700_s13  ;;  %p1709_p6 = scmp.lt.s32.totalorder %s1700_s13, %s1700_s13 }
  0x21   : > { %p1703_p10 = pnand %p1701_p9, %p1987_p13  ;;  %p1710_p12 = por %p1709_p6, %p1708_p2 }
  0x23   : > { %p1704_p1 = pneg %p1703_p10 }
  0x25   : > { %p1711_p0 = pnand %p1710_p12, %p1704_p1 }
  0x27   : > { %1714 = shalt.err (!%p1711_p0)
}
  0x28   : > { %s1880_s14 = smov 128   ;;  %s1881_s20 = smov 8  }
  0x29   : > { %1570 = dma.hbm_to_vmem [thread:$0]  (!%p1971_p11), %s2534_s1, 384, %s1964_s25, [#allocation6], %s1880_s14, %s1880_s14, %s1881_s20  }
  0x2a   : > { %s1715_s6 = scalar_lea.hbm %s2535_s2, 384 }
  0x2b   : > { %p1716_p1 = scmp.ne.s32.totalorder %s2535_s2, %s1715_s6  ;;  %p1722_p10 = scmp.lt.u32.totalorder %s1715_s6, %s2535_s2 }
  0x2d   : > { %p1718_p2 = pnand %p1716_p1, %p1987_p13 }
  0x2f   : > { %p1719_p6 = pneg %p1718_p2 }
  0x31   : > { %p1724_p3 = pnand %p1722_p10, %p1719_p6 }
  0x33   : > { %1727 = shalt.err (!%p1724_p3)
}
  0x34   : > { %s1728_s25 = scalar_lea.vmem %s1975_s28, 384  ;;  %p1736_p12 = scmp.lt.s32.totalorder %s1975_s28, %s1975_s28 }
  0x35   : > { %p1729_p5 = scmp.ne.s32.totalorder %s1975_s28, %s1728_s25  ;;  %p1737_p0 = scmp.lt.s32.totalorder %s1728_s25, %s1728_s25 }
  0x37   : > { %p1731_p7 = pnand %p1729_p5, %p1987_p13  ;;  %p1738_p1 = por %p1737_p0, %p1736_p12 }
  0x39   : > { %p1732_p9 = pneg %p1731_p7 }
  0x3b   : > { %p1739_p2 = pnand %p1738_p1, %p1732_p9 }
  0x3d   : > { %1742 = shalt.err (!%p1739_p2)
}
  0x3e   : > { %1573 = dma.hbm_to_vmem [thread:$0]  (!%p1971_p11), %s2535_s2, 384, %s1975_s28, [#allocation6], %s1880_s14, %s1880_s14, %s1881_s20  }
  0x3f   : > { %s1743_s29 = scalar_lea.hbm %s2536_s3, 384 }
  0x40   : > { %p1744_p6 = scmp.ne.s32.totalorder %s2536_s3, %s1743_s29  ;;  %p1750_p5 = scmp.lt.u32.totalorder %s1743_s29, %s2536_s3 }
  0x42   : > { %p1746_p10 = pnand %p1744_p6, %p1987_p13 }
  0x44   : > { %p1747_p3 = pneg %p1746_p10 }
  0x46   : > { %p1752_p7 = pnand %p1750_p5, %p1747_p3 }
  0x48   : > { %1755 = shalt.err (!%p1752_p7)
}
  0x49   : > { %s1756_s9 = scalar_lea.vmem %s181_s30, 384  ;;  %p1764_p1 = scmp.lt.s32.totalorder %s181_s30, %s181_s30 }
  0x4a   : > { %p1757_p9 = scmp.ne.s32.totalorder %s181_s30, %s1756_s9  ;;  %p1765_p2 = scmp.lt.s32.totalorder %s1756_s9, %s1756_s9 }
  0x4c   : > { %p1759_p12 = pnand %p1757_p9, %p1987_p13  ;;  %p1766_p4 = por %p1765_p2, %p1764_p1 }
  0x4e   : > { %p1760_p0 = pneg %p1759_p12 }
  0x50   : > { %p1767_p8 = pnand %p1766_p4, %p1760_p0 }
  0x52   : > { %1770 = shalt.err (!%p1767_p8)
}
  0x53   : > { %1576 = dma.hbm_to_vmem [thread:$0]  (!%p1971_p11), %s2536_s3, 384, %s181_s30, [#allocation9], %s1880_s14, %s1880_s14, %s1881_s20  }
  0x54   : > { %s2060_s10 = sadd.s32 1, %s1875_s18   ;;  %s29_s25 = sadd.s32 1, %s1871_s17 }
  0x55   : > { %s26_s26 = ssub.s32 %s1875_s18, %s2060_s10  ;;  %p36_p8 = scmp.ne.s32.totalorder %s1871_s17, %s1867_s16 }
  0x56   : > { %p27_p4 = scmp.eq.s32.totalorder %s26_s26, 0  ;;  %p37_p13 = scmp.eq.s32.totalorder %s1875_s18, 0 }
  0x57   : > { %p1588_p6 = scmp.lt.s32.totalorder %s1875_s18, 2  ;;  %p2546_p3 = scmp.eq.s32.totalorder %s1941_s19, 1 }
  0x58   : > { %s2070_s12 = scalar_select %p27_p4, %s1871_s17, %s29_s25  }
  0x59   : > { %p38_p10 = por %p37_p13, %p36_p8  ;;  %p2074_p5 = por %p2546_p3, %p36_p8 }
  0x5a   : > { %s194_s24 = sand.u32 1, %s1871_s17   ;;  %s1494_s27 = sshll.u32 %s1875_s18, 7 }
  0x5b   : > { %s1458_s30 = sshll.u32 %s194_s24, 3  ;;  %s2083_s29 = scalar_lea.hbm %s2533_s0, %s1494_s27 }
  0x5c   : > { %s198_s5 = scalar_lea.vmem [#allocation2], %s1458_s30  ;;  %p2085_p11 = pnand %p1588_p6, %p38_p10 }
  0x5d   : > { %s206_s6 = sshll.u32 %s198_s5, 4  ;;  %s195_s8 = scalar_lea.sflag [#allocation3], %s194_s24  ;;  %s2089_s6 = int_to_ptr.vmem [resolvable:$true] %s206_s6 }
  0x5e   : > { %s1771_s9 = scalar_lea.hbm %s2083_s29, 128  ;;  %p1773_p9 = pneg %p2085_p11 }
  0x5f   : > { %p1772_p7 = scmp.ne.s32.totalorder %s2083_s29, %s1771_s9  ;;  %s1776_s26 = scalar_lea.hbm %s2533_s0, 256 }
  0x60   : > { %p1777_p1 = scmp.lt.u32.totalorder %s2083_s29, %s2533_s0  ;;  %p1778_p2 = scmp.lt.u32.totalorder %s1776_s26, %s1771_s9 }
  0x61   : > { %p1774_p12 = pnand %p1773_p9, %p1772_p7  ;;  %p1780_p8 = scmp.lt.u32.totalorder %s1771_s9, %s2083_s29 }
  0x62   : > { %p1779_p4 = por %p1778_p2, %p1777_p1 }
  0x63   : > { %p1775_p0 = pneg %p1774_p12 }
  0x64   : > { %p1781_p13 = por %p1780_p8, %p1779_p4 }
  0x66   : > { %p1782_p6 = pnand %p1781_p13, %p1775_p0 }
  0x68   : > { %1785 = shalt.err (!%p1782_p6)
}
  0x69   : > { %s1786_s24 = scalar_lea.vmem %s2089_s6, 128  ;;  %s1882_s30 = smov [#allocation2]  }
  0x6a   : > { %p1787_p10 = scmp.ne.s32.totalorder %s2089_s6, %s1786_s24  ;;  %s1791_s14 = sshll.u32 %s1882_s30, 4  ;;  %s1792_s14 = int_to_ptr.vmem [resolvable:$false] %s1791_s14 }
  0x6b   : > { %s1793_s20 = scalar_lea.vmem %s1792_s14, 256  ;;  %p1794_p12 = scmp.lt.s32.totalorder %s2089_s6, %s1792_s14 }
  0x6c   : > { %p1789_p3 = pnand %p1787_p10, %p1773_p9  ;;  %p1795_p1 = scmp.lt.s32.totalorder %s1793_s20, %s1786_s24 }
  0x6e   : > { %p1790_p7 = pneg %p1789_p3  ;;  %p1796_p2 = por %p1795_p1, %p1794_p12 }
  0x70   : > { %p1797_p4 = pnand %p1796_p2, %p1790_p7 }
  0x72   : > { %1800 = shalt.err (!%p1797_p4)
}
  0x73   : > { %1580 = dma.hbm_to_vmem [thread:$0]  (!%p2085_p11), %s2083_s29, 128, %s2089_s6, %s195_s8  }
  0x74   : > { %p2549_p0 = scmp.ne.s32.totalorder %s2543_s23, 0 }
  0x75   : > { %s2119_s5 = sand.u32 (!%p2549_p0), 1, %s1867_s16   ;;  %p2550_p9 = scmp.ne.s32.totalorder (!%p2549_p0), %s2541_s21, 0 }
  0x76   : > { %215 = sbr.rel (%p2549_p0) target bundleno = 2069 (0x815), region = 36  ;;  %s1462_s9 = sshll.u32 (!%p2549_p0), %s2119_s5, 3 }
  0x77   : > { %s218_s28 = scalar_lea.sflag (!%p2549_p0), [#allocation3], %s2119_s5  ;;  %s221_s11 = scalar_lea.vmem (!%p2549_p0), [#allocation2], %s1462_s9 }
  0x7d   : > { %1846 = dma.done.wait (%p2550_p9), %s218_s28, 128  }
  0x7e   : > { %1848 = vsyncadd (%p2550_p9), %s218_s28, 4294967168  ;;  %p2551_p11 = scmp.eq.s32.totalorder %s1941_s19, 0 }
  0x80   : > { %1850 = dma.done.wait (%p2551_p11), [#allocation6], 768   ;;  %p2552_p8 = pmov %p2551_p11 }
  0x82   : > { %1852 = vsyncadd (%p2552_p8), [#allocation6], 4294966528  ;;  %p2553_p13 = pmov %p2552_p8 }
  0x83   : > { %p2554_p6 = pmov %p2552_p8 }
  0x84   : > { %1854 = dma.done.wait (%p2553_p13), [#allocation9], 384  }
  0x85   : > { %1856 = vsyncadd (%p2554_p6), [#allocation9], 4294966912  ;;  %v2137_v0 = vld [vmem:[%s221_s11] sm:$0xff]  ;;  %vm262_vm0 = vcmask 1043456   ;;  %s1883_s21 = smov 32   ;;  %s1884_s23 = smov 16   ;;  %v265_v4 = vlaneseq }
  0x86   : > { %v2141_v1 = vcombine.high %v2137_v0, %v2137_v0  ;;  %v2153_v3 = vsel %vm262_vm0, %v2137_v0, 0.0  ;;  %vm285_vm1 = vcmask 261120   ;;  %vm324_vm2 = vcmask 130048   ;;  %s1885_s29 = smov 127   ;;  %s1887_s6 = smov 1   ;;  %v318_v56 = vld [vmem:[#allocation5] sm:$0xff] }
  0x87   : > { %v2159_v5 = vand.u32 127, %v265_v4  ;;  %v1886_v18 = vmov 0.0   ;;  %vm299_vm6 = vcmask 7168   ;;  %vm310_vm9 = vcmask 1039360   ;;  %s1889_s7 = smov 112   ;;  %s1890_s8 = smov 96  }
  0x88   : > { %v2145_v2 = vsel %vm262_vm0, %v2141_v1, 0.0  ;;  %499 = vmatprep.mubr.f32.mxu0 %v1886_v18  ;;  %425 = vmatprep.mubr.f32.mxu1 %v1886_v18  ;;  %vm1888_vm10 = vmmov 1   ;;  %s1891_s26 = smov 64   ;;  %s1892_s25 = smov 80  }
  0x89   : > { %279 = vrot.lane.b32.xlu0 %v2145_v2, %s1883_s21  ;;  %319 = vrot.lane.b32.xlu1 %v2145_v2, %s1884_s23  ;;  %vm276_vm3 = vcmp.lt.s32.totalorder %v2159_v5, 32  ;;  %vm274_vm4 = vcmp.lt.s32.totalorder %v2159_v5, 16  ;;  %v1646_v19 = vpack.i.bf16 %v2153_v3, %v2145_v2  ;;  %v267_v20 = vadd.s32 128, %v2159_v5  ;;  %s1893_s27 = smov 48   ;;  %s1491_s24 = sshll.u32 %s1941_s19, 7 }
  0x8a   : > { %v268_v21 = vand.u32 15, %v2159_v5  ;;  %vm1470_vm8 = vmneg %vm276_vm3  ;;  %s257_s30 = scalar_lea.vmem [#allocation10], %s1462_s9  ;;  %s2488_s11 = scalar_lea.hbm %s2537_s4, %s1491_s24 }
  0x8b   : > { %v269_v22 = vand.u32 15, %v267_v20  ;;  %vm2223_vm11 = vmpackc.low %vm1470_vm8, %vm1888_vm10  ;;  %vm357_vm8 = vcmask 195584   ;;  %s1353_s14 = sshll.u32 %s257_s30, 4  ;;  %s1894_s9 = smov [#allocation10]   ;;  %s2490_s14 = int_to_ptr.vmem [resolvable:$true] %s1353_s14 }
  0x8c   : > { %vm2204_vm5 = vcmp.eq.s32.totalorder %v268_v21, 0  ;;  %vm1467_vm13 = vmneg %vm274_vm4  ;;  %vm2255_vm15 = vcmp.eq.s32.totalorder %v268_v21, 15  ;;  %s1801_s19 = scalar_lea.vmem %s2490_s14, 128 }
  0x8d   : > { %283 = vrot.lane.b32.xlu0 %v2153_v3, %s1883_s21  ;;  %322 = vrot.lane.b32.xlu1 %v2153_v3, %s1884_s23  ;;  %vm2208_vm7 = vcmp.eq.s32.totalorder %v269_v22, 0  ;;  %vm2230_vm12 = vcmp.eq.s32.totalorder %v269_v22, 15  ;;  %vm2251_vm14 = vmpackc.low %vm1467_vm13, %vm1888_vm10  ;;  %p1802_p10 = scmp.ne.s32.totalorder %s2490_s14, %s1801_s19 }
  0x8e   : > { %vm1506_vm13 = vmpackc.low %vm262_vm0, %vm1888_vm10  ;;  %vm1296_vm0 = vcmask 916480  }
  0x8f   : > { %p1803_p3 = pnand %p1802_p10, %p2074_p5 }
  0x91   : > { %p1804_p7 = pneg %p1803_p3 }
  0xfb   : > { %v280_v6 = vpop.permute.xlu0 %279  ;;  %v320_v7 = vpop.permute.xlu1 %319 }
  0xff   : > { %v284_v8 = vpop.permute.xlu0 %283  ;;  %v323_v9 = vpop.permute.xlu1 %322 }
 0x100   : > { %v2164_v10 = vsel %vm285_vm1, %v284_v8, %v280_v6  ;;  %v289_v11 = vsel %vm285_vm1, %v280_v6, %v284_v8  ;;  %v2168_v12 = vsel %vm324_vm2, %v323_v9, %v320_v7  ;;  %v328_v13 = vsel %vm324_vm2, %v320_v7, %v323_v9 }
 0x101   : > { %v2173_v14 = vsel %vm276_vm3, 0.0, %v289_v11  ;;  %v2177_v15 = vsel %vm274_vm4, 0.0, %v328_v13 }
 0x102   : > { %306 = vrot.lane.b32.xlu1 %v2173_v14, %s1885_s29  ;;  %v1641_v16 = vpack.i.bf16 %v2173_v14, %v2164_v10  ;;  %v1651_v17 = vpack.i.bf16 %v2177_v15, %v2168_v12 }
 0x104   : > { %1642 = vrot.lane.b32.xlu0 %v1641_v16, %s1887_s6 }
 0x106   : > { %1652 = vrot.lane.b32.xlu1 %v1651_v17, %s1887_s6 }
 0x108   : > { %308 = vrot.lane.b32.xlu0 %v2164_v10, %s1885_s29 }
 0x10a   : > { %344 = vrot.lane.b32.xlu1 %v2177_v15, %s1885_s29 }
 0x10c   : > { %1647 = vrot.lane.b32.xlu0 %v1646_v19, %s1887_s6 }
 0x10e   : > { %517 = vrot.lane.b32.xlu1 %v2153_v3, %s1885_s29 }
 0x110   : > { %346 = vrot.lane.b32.xlu0 %v2168_v12, %s1885_s29 }
 0x114   : > { %519 = vrot.lane.b32.xlu0 %v2145_v2, %s1885_s29 }
 0x174   : > { %v307_v23 = vpop.permute.xlu1 %306 }
 0x176   : > { %v1643_v25 = vpop.permute.xlu0 %1642 }
 0x177   : > { %v1645_v26 = vunpack.i.h.bf16 %v1643_v25  ;;  %v1644_v27 = vunpack.i.l.bf16 %v1643_v25 }
 0x178   : > { %v1653_v29 = vpop.permute.xlu1 %1652 }
 0x179   : > { %v303_v30 = vsel %vm299_vm6, %v1644_v27, %v1645_v26  ;;  %v1655_v31 = vunpack.i.h.bf16 %v1653_v29  ;;  %v1654_v32 = vunpack.i.l.bf16 %v1653_v29  ;;  %v300_v33 = vsel %vm299_vm6, %v1645_v26, %v1644_v27 }
 0x17a   : > { %v309_v34 = vpop.permute.xlu0 %308  ;;  %v305_v35 = vsel %vm2208_vm7, %v2164_v10, %v300_v33  ;;  %v304_v36 = vsel %vm2204_vm5, %v2173_v14, %v303_v30 }
 0x17b   : > { %v341_v38 = vsel %vm299_vm6, %v1654_v32, %v1655_v31  ;;  %v315_v39 = vsel %vm310_vm9, %v309_v34, %v307_v23  ;;  %v1500_v40 = vpack.c.bf16 %v2164_v10, %v305_v35  ;;  %v1502_v42 = vpack.c.bf16 %v289_v11, %v304_v36 }
 0x17c   : > { %v338_v43 = vsel %vm299_vm6, %v1655_v31, %v1654_v32  ;;  %v342_v44 = vsel %vm2204_vm5, %v2177_v15, %v341_v38  ;;  %v311_v47 = vsel %vm310_vm9, %v307_v23, %v309_v34  ;;  %v317_v50 = vsel %vm2230_vm12, %v2164_v10, %v315_v39  ;;  %v345_v55 = vpop.permute.xlu1 %344 }
 0x17d   : > { %1501 = vmatprep.subr.bf16.mxu0 %v1500_v40  ;;  %v343_v45 = vsel %vm2208_vm7, %v2168_v12, %v338_v43  ;;  %v1497_v46 = vpack.c.bf16 %v328_v13, %v342_v44  ;;  %v316_v59 = vsel %vm2255_vm15, %v2173_v14, %v311_v47 }
 0x17e   : > { %v1648_v48 = vpop.permute.xlu0 %1647  ;;  %1504 = vmatpush1.bf16.msk.msra.mxu0 %vm2223_vm11, %v1502_v42  ;;  %v1495_v49 = vpack.c.bf16 %v2168_v12, %v343_v45 }
 0x17f   : > { %v1650_v53 = vunpack.i.h.bf16 %v1648_v48  ;;  %v1649_v54 = vunpack.i.l.bf16 %v1648_v48  ;;  %439 = vmatprep.subr.mxu0 %v317_v50 }
 0x180   : > { %1496 = vmatprep.subr.bf16.mxu1 %v1495_v49  ;;  %v518_v9 = vpop.permute.xlu1 %517 }
 0x181   : > { %v511_v57 = vsel %vm299_vm6, %v1650_v53, %v1649_v54  ;;  %v514_v58 = vsel %vm299_vm6, %v1649_v54, %v1650_v53  ;;  %1499 = vmatpush1.bf16.msk.msra.mxu1 %vm2251_vm14, %v1497_v46 }
 0x182   : > { %v515_v60 = vsel %vm2204_vm5, %v2153_v3, %v514_v58  ;;  %v347_v61 = vpop.permute.xlu0 %346  ;;  %440 = vmatpush1.msra.mxu0 %v316_v59  ;;  %v516_v62 = vsel %vm2208_vm7, %v2145_v2, %v511_v57 }
 0x183   : > { %v1508_v63 = vpack.c.bf16 %v2137_v0, %v515_v60  ;;  %v348_v4 = vsel %vm310_vm9, %v345_v55, %v347_v61  ;;  %v352_v6 = vsel %vm310_vm9, %v347_v61, %v345_v55  ;;  %1472 = vmatmul.mubr.msk.f32.vlgmr.msra.gmra.mrb[0].mxu0 %vm357_vm8, %v318_v56  ;;  %v1505_v7 = vpack.c.bf16 %v2141_v1, %v516_v62  ;;  %v356_v0 = vld [vmem:[#allocation5 + $0x8] sm:$0xff] }
 0x184   : > { %v354_v8 = vsel %vm2230_vm12, %v2168_v12, %v352_v6  ;;  %v353_v10 = vsel %vm2255_vm15, %v2177_v15, %v348_v4  ;;  %597 = vmatprep.mubr.f32.mxu0 %v1886_v18  ;;  %v529_v15 = vld [vmem:[#allocation5 + $0x10] sm:$0xff] }
 0x185   : > { %365 = vmatprep.subr.mxu1 %v354_v8  ;;  %1507 = vmatprep.subr.msk.bf16.mxu0 %vm1506_vm13, %v1505_v7  ;;  %v684_v8 = vld [vmem:[#allocation7 + $0x8] sm:$0xff] }
 0x186   : > { %366 = vmatpush1.msra.mxu1 %v353_v10  ;;  %v520_v11 = vpop.permute.xlu0 %519  ;;  %1510 = vmatpush1.bf16.msk.msra.mxu0 %vm1506_vm13, %v1508_v63 }
 0x187   : > { %v521_v13 = vsel %vm310_vm9, %v518_v9, %v520_v11  ;;  %v525_v1 = vsel %vm310_vm9, %v520_v11, %v518_v9  ;;  %1469 = vmatmul.mubr.msk.f32.vlgmr.msra.gmra.mrb[0].mxu1 %vm357_vm8, %v356_v0 }
 0x188   : > { %v527_v12 = vsel %vm2230_vm12, %v2145_v2, %v525_v1  ;;  %v526_v14 = vsel %vm2255_vm15, %v2153_v3, %v521_v13  ;;  %752 = vmatprep.mubr.f32.mxu1 %v1886_v18 }
 0x189   : > { %537 = vmatprep.subr.mxu0 %v527_v12 }
 0x18a   : > { %538 = vmatpush1.msra.mxu0 %v526_v14 }
 0x18b   : > { %1475 = vmatmul.mubr.msk.f32.vlgmr.msra.gmra.mrb[0].mxu0 %vm357_vm8, %v529_v15 }
 0x18c   : > { %1079 = vmatprep.mubr.f32.mxu0 %v1886_v18 }
 0x25a   : > { %v427_v16 = vpop.f32.mrb[0].mxu1 }
 0x25b   : > { %v429_v17 = vpop.f32.mrb[1].mxu1 }
 0x25e   : > { %v599_v19 = vpop.f32.mrb[0].mxu0 }
 0x25f   : > { %v1539_v20 = vadd.f32 %v599_v19, %v427_v16  ;;  %v601_v21 = vpop.f32.mrb[1].mxu0 }
 0x260   : > { %v1540_v22 = vadd.f32 %v601_v21, %v429_v17 }
 0x261   : > { %v606_v2 = vmul.f32 0.1, %v1539_v20 }
 0x262   : > { %v607_v23 = vmul.f32 0.1, %v1540_v22 }
 0x263   : > { %v2298_v25 = vmax.f32 %v1539_v20, %v606_v2 }
 0x264   : > { %v2300_v3 = vmax.f32 %v1540_v22, %v607_v23 }
 0x265   : > { %651 = vrot.lane.b32.xlu0 %v2298_v25, %s1884_s23 }
 0x266   : > { %648 = vrot.lane.b32.xlu1 %v2300_v3, %s1884_s23  ;;  %v1666_v40 = vpack.i.bf16 %v2298_v25, %v2300_v3 }
 0x269   : > { %615 = vrot.lane.b32.xlu0 %v2298_v25, %s1883_s21 }
 0x26a   : > { %611 = vrot.lane.b32.xlu1 %v2300_v3, %s1883_s21 }
 0x2d7   : > { %v652_v26 = vpop.permute.xlu0 %651 }
 0x2d8   : > { %v649_v27 = vpop.permute.xlu1 %648 }
 0x2d9   : > { %v653_v29 = vsel %vm324_vm2, %v652_v26, %v649_v27  ;;  %v656_v30 = vsel %vm324_vm2, %v649_v27, %v652_v26  ;;  %v647_v26 = vld [vmem:[#allocation7] sm:$0xff] }
 0x2da   : > { %v657_v31 = vsel %vm274_vm4, 0.0, %v656_v30 }
 0x2db   : > { %v616_v32 = vpop.permute.xlu0 %615  ;;  %672 = vrot.lane.b32.xlu0 %v657_v31, %s1885_s29  ;;  %v1656_v33 = vpack.i.bf16 %v657_v31, %v653_v29 }
 0x2dc   : > { %v612_v34 = vpop.permute.xlu1 %611 }
 0x2dd   : > { %v617_v35 = vsel %vm285_vm1, %v616_v32, %v612_v34  ;;  %v620_v36 = vsel %vm285_vm1, %v612_v34, %v616_v32  ;;  %1657 = vrot.lane.b32.xlu1 %v1656_v33, %s1887_s6  ;;  %v856_v33 = vld [vmem:[#allocation7 + $0x10] sm:$0xff] }
 0x2de   : > { %v621_v38 = vsel %vm276_vm3, 0.0, %v620_v36 }
 0x2df   : > { %v1661_v39 = vpack.i.bf16 %v621_v38, %v617_v35 }
 0x2e1   : > { %674 = vrot.lane.b32.xlu1 %v653_v29, %s1885_s29  ;;  %1662 = vrot.lane.b32.xlu0 %v1661_v39, %s1887_s6 }
 0x2e5   : > { %636 = vrot.lane.b32.xlu1 %v621_v38, %s1885_s29  ;;  %638 = vrot.lane.b32.xlu0 %v617_v35, %s1885_s29 }
 0x2e9   : > { %1667 = vrot.lane.b32.xlu1 %v1666_v40, %s1887_s6  ;;  %844 = vrot.lane.b32.xlu0 %v2298_v25, %s1885_s29 }
 0x2ed   : > { %846 = vrot.lane.b32.xlu1 %v2300_v3, %s1885_s29 }
 0x34d   : > { %v673_v42 = vpop.permute.xlu0 %672 }
 0x34f   : > { %v1658_v43 = vpop.permute.xlu1 %1657 }
 0x350   : > { %v1660_v44 = vunpack.i.h.bf16 %v1658_v43  ;;  %v1659_v45 = vunpack.i.l.bf16 %v1658_v43 }
 0x352   : > { %v666_v46 = vsel %vm299_vm6, %v1660_v44, %v1659_v45  ;;  %v669_v47 = vsel %vm299_vm6, %v1659_v45, %v1660_v44 }
 0x353   : > { %v670_v48 = vsel %vm2204_vm5, %v657_v31, %v669_v47  ;;  %v1663_v49 = vpop.permute.xlu0 %1662  ;;  %v675_v50 = vpop.permute.xlu1 %674  ;;  %v671_v53 = vsel %vm2208_vm7, %v653_v29, %v666_v46 }
 0x354   : > { %v1513_v54 = vpack.c.bf16 %v656_v30, %v670_v48  ;;  %v1665_v55 = vunpack.i.h.bf16 %v1663_v49  ;;  %v1664_v56 = vunpack.i.l.bf16 %v1663_v49  ;;  %v680_v57 = vsel %vm310_vm9, %v675_v50, %v673_v42 }
 0x355   : > { %v1511_v58 = vpack.c.bf16 %v653_v29, %v671_v53  ;;  %v676_v62 = vsel %vm310_vm9, %v673_v42, %v675_v50  ;;  %v682_v4 = vsel %vm2230_vm12, %v653_v29, %v680_v57 }
 0x356   : > { %v630_v59 = vsel %vm299_vm6, %v1665_v55, %v1664_v56  ;;  %v633_v60 = vsel %vm299_vm6, %v1664_v56, %v1665_v55  ;;  %v681_v0 = vsel %vm2255_vm15, %v657_v31, %v676_v62 }
 0x357   : > { %1512 = vmatprep.subr.bf16.mxu1 %v1511_v58  ;;  %v637_v61 = vpop.permute.xlu1 %636  ;;  %v639_v63 = vpop.permute.xlu0 %638  ;;  %v635_v6 = vsel %vm2208_vm7, %v617_v35, %v630_v59  ;;  %v634_v7 = vsel %vm2204_vm5, %v621_v38, %v633_v60 }
 0x358   : > { %1515 = vmatpush1.bf16.msk.msra.mxu1 %vm2251_vm14, %v1513_v54  ;;  %v644_v9 = vsel %vm310_vm9, %v639_v63, %v637_v61  ;;  %v1516_v11 = vpack.c.bf16 %v617_v35, %v635_v6  ;;  %v1518_v13 = vpack.c.bf16 %v620_v36, %v634_v7  ;;  %v640_v14 = vsel %vm310_vm9, %v637_v61, %v639_v63 }
 0x359   : > { %692 = vmatprep.subr.mxu1 %v682_v4  ;;  %v646_v17 = vsel %vm2230_vm12, %v617_v35, %v644_v9  ;;  %v645_v22 = vsel %vm2255_vm15, %v621_v38, %v640_v14 }
 0x35b   : > { %v1668_v10 = vpop.permute.xlu1 %1667  ;;  %v845_v23 = vpop.permute.xlu0 %844 }
 0x35c   : > { %v1670_v1 = vunpack.i.h.bf16 %v1668_v10  ;;  %v1669_v12 = vunpack.i.l.bf16 %v1668_v10  ;;  %693 = vmatpush1.msra.mxu1 %v681_v0 }
 0x35d   : > { %1478 = vmatmul.mubr.msk.f32.vlgmr.msra.gmra.mrb[2].mxu1 %vm357_vm8, %v684_v8  ;;  %1517 = vmatprep.subr.bf16.mxu1 %v1516_v11 }
 0x35e   : > { %v838_v15 = vsel %vm299_vm6, %v1670_v1, %v1669_v12  ;;  %v841_v16 = vsel %vm299_vm6, %v1669_v12, %v1670_v1  ;;  %1520 = vmatpush1.bf16.msk.msra.mxu1 %vm2223_vm11, %v1518_v13  ;;  %826 = vmatprep.mubr.f32.mxu1 %v1886_v18 }
 0x35f   : > { %766 = vmatprep.subr.mxu1 %v646_v17  ;;  %v843_v19 = vsel %vm2208_vm7, %v2300_v3, %v838_v15  ;;  %v847_v20 = vpop.permute.xlu1 %846  ;;  %v842_v2 = vsel %vm2204_vm5, %v2298_v25, %v841_v16  ;;  %v1011_v17 = vld [vmem:[#allocation8 + $0x8] sm:$0xff] }
 0x360   : > { %v1521_v21 = vpack.c.bf16 %v2300_v3, %v843_v19  ;;  %v852_v27 = vsel %vm310_vm9, %v847_v20, %v845_v23  ;;  %v1523_v29 = vpack.c.bf16 %v2298_v25, %v842_v2  ;;  %v848_v30 = vsel %vm310_vm9, %v845_v23, %v847_v20 }
 0x361   : > { %v854_v31 = vsel %vm2230_vm12, %v2300_v3, %v852_v27  ;;  %v853_v32 = vsel %vm2255_vm15, %v2298_v25, %v848_v30 }
 0x362   : > { %767 = vmatpush1.msra.mxu1 %v645_v22 }
 0x363   : > { %1522 = vmatprep.subr.bf16.mxu1 %v1521_v21 }
 0x365   : > { %1481 = vmatmul.mubr.msk.f32.vlgmr.msra.gmra.mrb[2].mxu1 %vm357_vm8, %v647_v26 }
 0x366   : > { %1524 = vmatpush1.bf16.msra.mxu1 %v1523_v29  ;;  %924 = vmatprep.mubr.f32.mxu1 %v1886_v18 }
 0x367   : > { %864 = vmatprep.subr.mxu1 %v854_v31 }
 0x36a   : > { %865 = vmatpush1.msra.mxu1 %v853_v32 }
 0x36d   : > { %1482 = vmatmul.mubr.msk.f32.vlgmr.msra.gmra.mrb[2].mxu1 %vm357_vm8, %v856_v33 }
 0x440   : > { %v926_v34 = vpop.f32.mrb[2].mxu1 }
 0x441   : > { %v933_v35 = vmul.f32 0.1, %v926_v34  ;;  %v928_v36 = vpop.f32.mrb[3].mxu1 }
 0x442   : > { %v934_v38 = vmul.f32 0.1, %v928_v36 }
 0x443   : > { %v2382_v39 = vmax.f32 %v926_v34, %v933_v35 }
 0x444   : > { %v2384_v40 = vmax.f32 %v928_v36, %v934_v38  ;;  %v974_v36 = vld [vmem:[#allocation8] sm:$0xff] }
 0x445   : > { %978 = vrot.lane.b32.xlu1 %v2382_v39, %s1884_s23 }
 0x446   : > { %975 = vrot.lane.b32.xlu0 %v2384_v40, %s1884_s23  ;;  %v1681_v54 = vpack.i.bf16 %v2382_v39, %v2384_v40 }
 0x449   : > { %942 = vrot.lane.b32.xlu1 %v2382_v39, %s1883_s21 }
 0x44a   : > { %938 = vrot.lane.b32.xlu0 %v2384_v40, %s1883_s21 }
 0x4b7   : > { %v979_v25 = vpop.permute.xlu1 %978 }
 0x4b8   : > { %v976_v3 = vpop.permute.xlu0 %975 }
 0x4b9   : > { %v980_v42 = vsel %vm324_vm2, %v979_v25, %v976_v3  ;;  %v983_v43 = vsel %vm324_vm2, %v976_v3, %v979_v25 }
 0x4ba   : > { %v984_v44 = vsel %vm274_vm4, 0.0, %v983_v43 }
 0x4bb   : > { %v943_v45 = vpop.permute.xlu1 %942  ;;  %999 = vrot.lane.b32.xlu1 %v984_v44, %s1885_s29  ;;  %v1671_v46 = vpack.i.bf16 %v984_v44, %v980_v42 }
 0x4bc   : > { %v939_v47 = vpop.permute.xlu0 %938 }
 0x4bd   : > { %v944_v48 = vsel %vm285_vm1, %v943_v45, %v939_v47  ;;  %v947_v49 = vsel %vm285_vm1, %v939_v47, %v943_v45  ;;  %1672 = vrot.lane.b32.xlu0 %v1671_v46, %s1887_s6 }
 0x4be   : > { %v948_v50 = vsel %vm276_vm3, 0.0, %v947_v49  ;;  %vm1329_vm3 = vcmask 392192  }
 0x4bf   : > { %v1676_v53 = vpack.i.bf16 %v948_v50, %v944_v48 }
 0x4c1   : > { %1001 = vrot.lane.b32.xlu0 %v980_v42, %s1885_s29  ;;  %1677 = vrot.lane.b32.xlu1 %v1676_v53, %s1887_s6 }
 0x4c5   : > { %963 = vrot.lane.b32.xlu0 %v948_v50, %s1885_s29  ;;  %965 = vrot.lane.b32.xlu1 %v944_v48, %s1885_s29 }
 0x4c9   : > { %1682 = vrot.lane.b32.xlu0 %v1681_v54, %s1887_s6  ;;  %1171 = vrot.lane.b32.xlu1 %v2382_v39, %s1885_s29 }
 0x4cd   : > { %1173 = vrot.lane.b32.xlu0 %v2384_v40, %s1885_s29 }
 0x52d   : > { %v1000_v55 = vpop.permute.xlu1 %999 }
 0x52f   : > { %v1673_v56 = vpop.permute.xlu0 %1672 }
 0x530   : > { %v1675_v57 = vunpack.i.h.bf16 %v1673_v56  ;;  %v1674_v58 = vunpack.i.l.bf16 %v1673_v56 }
 0x532   : > { %v993_v59 = vsel %vm299_vm6, %v1675_v57, %v1674_v58  ;;  %v996_v60 = vsel %vm299_vm6, %v1674_v58, %v1675_v57 }
 0x533   : > { %v997_v61 = vsel %vm2204_vm5, %v984_v44, %v996_v60  ;;  %v1678_v62 = vpop.permute.xlu1 %1677  ;;  %v1002_v63 = vpop.permute.xlu0 %1001  ;;  %v998_v4 = vsel %vm2208_vm7, %v980_v42, %v993_v59 }
 0x534   : > { %v1527_v6 = vpack.c.bf16 %v983_v43, %v997_v61  ;;  %v1680_v7 = vunpack.i.h.bf16 %v1678_v62  ;;  %v1679_v8 = vunpack.i.l.bf16 %v1678_v62  ;;  %v1007_v9 = vsel %vm310_vm9, %v1002_v63, %v1000_v55 }
 0x535   : > { %v1525_v10 = vpack.c.bf16 %v980_v42, %v998_v4  ;;  %v1003_v1 = vsel %vm310_vm9, %v1000_v55, %v1002_v63  ;;  %v1009_v14 = vsel %vm2230_vm12, %v980_v42, %v1007_v9  ;;  %v1183_v42 = vld [vmem:[#allocation8 + $0x10] sm:$0xff] }
 0x536   : > { %v957_v0 = vsel %vm299_vm6, %v1680_v7, %v1679_v8  ;;  %v960_v11 = vsel %vm299_vm6, %v1679_v8, %v1680_v7  ;;  %v1008_v21 = vsel %vm2255_vm15, %v984_v44, %v1003_v1 }
 0x537   : > { %1526 = vmatprep.subr.bf16.mxu0 %v1525_v10  ;;  %v964_v13 = vpop.permute.xlu0 %963  ;;  %v966_v12 = vpop.permute.xlu1 %965  ;;  %v962_v15 = vsel %vm2208_vm7, %v944_v48, %v957_v0  ;;  %v961_v16 = vsel %vm2204_vm5, %v948_v50, %v960_v11 }
 0x538   : > { %1529 = vmatpush1.bf16.msk.msra.mxu0 %vm2251_vm14, %v1527_v6  ;;  %v971_v19 = vsel %vm310_vm9, %v966_v12, %v964_v13  ;;  %v1530_v22 = vpack.c.bf16 %v944_v48, %v962_v15  ;;  %v1532_v51 = vpack.c.bf16 %v947_v49, %v961_v16  ;;  %v967_v26 = vsel %vm310_vm9, %v964_v13, %v966_v12 }
 0x539   : > { %1019 = vmatprep.subr.mxu0 %v1009_v14  ;;  %v973_v30 = vsel %vm2230_vm12, %v944_v48, %v971_v19  ;;  %v972_v34 = vsel %vm2255_vm15, %v948_v50, %v967_v26 }
 0x53b   : > { %v1683_v20 = vpop.permute.xlu0 %1682  ;;  %v1172_v35 = vpop.permute.xlu1 %1171 }
 0x53c   : > { %v1685_v2 = vunpack.i.h.bf16 %v1683_v20  ;;  %v1684_v23 = vunpack.i.l.bf16 %v1683_v20  ;;  %1020 = vmatpush1.msra.mxu0 %v1008_v21 }
 0x53d   : > { %1485 = vmatmul.mubr.msk.f32.vlgmr.msra.gmra.mrb[2].mxu0 %vm357_vm8, %v1011_v17  ;;  %1531 = vmatprep.subr.bf16.mxu0 %v1530_v22 }
 0x53e   : > { %v1165_v27 = vsel %vm299_vm6, %v1685_v2, %v1684_v23  ;;  %v1168_v29 = vsel %vm299_vm6, %v1684_v23, %v1685_v2  ;;  %1534 = vmatpush1.bf16.msk.msra.mxu0 %vm2223_vm11, %v1532_v51  ;;  %1153 = vmatprep.mubr.f32.mxu0 %v1886_v18  ;;  %vm1335_vm6 = vcmask 785408  }
 0x53f   : > { %1093 = vmatprep.subr.mxu0 %v973_v30  ;;  %v1170_v31 = vsel %vm2208_vm7, %v2384_v40, %v1165_v27  ;;  %v1174_v32 = vpop.permute.xlu0 %1173  ;;  %v1169_v37 = vsel %vm2204_vm5, %v2382_v39, %v1168_v29  ;;  %vm1333_vm5 = vcmask 654336  }
 0x540   : > { %v1535_v33 = vpack.c.bf16 %v2384_v40, %v1170_v31  ;;  %v1179_v38 = vsel %vm310_vm9, %v1174_v32, %v1172_v35  ;;  %v1537_v25 = vpack.c.bf16 %v2382_v39, %v1169_v37  ;;  %v1175_v28 = vsel %vm310_vm9, %v1172_v35, %v1174_v32 }
 0x541   : > { %v1181_v3 = vsel %vm2230_vm12, %v2384_v40, %v1179_v38  ;;  %v1180_v24 = vsel %vm2255_vm15, %v2382_v39, %v1175_v28 }
 0x542   : > { %1094 = vmatpush1.msra.mxu0 %v972_v34 }
 0x543   : > { %1536 = vmatprep.subr.bf16.mxu0 %v1535_v33 }
 0x545   : > { %1488 = vmatmul.mubr.msk.f32.vlgmr.msra.gmra.mrb[2].mxu0 %vm357_vm8, %v974_v36 }
 0x546   : > { %1538 = vmatpush1.bf16.msra.mxu0 %v1537_v25  ;;  %1251 = vmatprep.mubr.f32.mxu0 %v1886_v18 }
 0x547   : > { %1191 = vmatprep.subr.mxu0 %v1181_v3 }
 0x54a   : > { %1192 = vmatpush1.msra.mxu0 %v1180_v24 }
 0x54d   : > { %1489 = vmatmul.mubr.msk.f32.vlgmr.msra.gmra.mrb[2].mxu0 %vm357_vm8, %v1183_v42 }
 0x620   : > { %v1253_v43 = vpop.f32.mrb[2].mxu0 }
 0x621   : > { %v1260_v44 = vmul.f32 0.1, %v1253_v43  ;;  %v1255_v45 = vpop.f32.mrb[3].mxu0 }
 0x622   : > { %v1261_v46 = vmul.f32 0.1, %v1255_v45 }
 0x623   : > { %v1262_v47 = vmax.f32 %v1253_v43, %v1260_v44 }
 0x624   : > { %v1263_v48 = vmax.f32 %v1255_v45, %v1261_v46 }
 0x625   : > { %1269 = vrot.lane.b32.xlu0 %v1262_v47, %s1884_s23 }
 0x626   : > { %1265 = vrot.lane.b32.xlu1 %v1263_v48, %s1884_s23 }
 0x697   : > { %v1270_v18 = vpop.permute.xlu0 %1269 }
 0x698   : > { %v1266_v41 = vpop.permute.xlu1 %1265 }
 0x699   : > { %v1274_v40 = vsel %vm324_vm2, %v1266_v41, %v1270_v18  ;;  %v1271_v52 = vsel %vm324_vm2, %v1270_v18, %v1266_v41 }
 0x69a   : > { %1281 = vrot.lane.b32.xlu0 %v1271_v52, %s1885_s29  ;;  %v1275_v39 = vsel %vm274_vm4, 0.0, %v1274_v40  ;;  %vm1331_vm4 = vcmask 523264  }
 0x69b   : > { %1279 = vrot.lane.b32.xlu1 %v1275_v39, %s1885_s29 }
 0x70c   : > { %v1282_v49 = vpop.permute.xlu0 %1281 }
 0x70d   : > { %v1280_v50 = vpop.permute.xlu1 %1279 }
 0x70e   : > { %v1283_v53 = vsel %vm310_vm9, %v1280_v50, %v1282_v49  ;;  %v1287_v54 = vsel %vm310_vm9, %v1282_v49, %v1280_v50 }
 0x70f   : > { %v1288_v55 = vmax.f32 %v1275_v39, %v1283_v53  ;;  %v1289_v56 = vmax.f32 %v1271_v52, %v1287_v54 }
 0x711   : > { %1294 = vrot.lane.b32.xlu0 %v1289_v56, %s1889_s7  ;;  %1292 = vrot.lane.b32.xlu1 %v1288_v55, %s1889_s7 }
 0x783   : > { %v1295_v57 = vpop.permute.xlu0 %1294  ;;  %v1293_v58 = vpop.permute.xlu1 %1292 }
 0x784   : > { %v1297_v59 = vsel %vm1296_vm0, %v1293_v58, %v1295_v57  ;;  %v1301_v60 = vsel %vm1296_vm0, %v1295_v57, %v1293_v58 }
 0x785   : > { %v1302_v5 = vmax.f32 %v1288_v55, %v1297_v59  ;;  %v1303_v61 = vmax.f32 %v1289_v56, %v1301_v60 }
 0x787   : > { %1308 = vrot.lane.b32.xlu0 %v1302_v5, %s1890_s8  ;;  %1305 = vrot.lane.b32.xlu1 %v1302_v5, %s1889_s7 }
 0x78b   : > { %1315 = vrot.lane.b32.xlu0 %v1303_v61, %s1891_s26  ;;  %1311 = vrot.lane.b32.xlu1 %v1302_v5, %s1892_s25 }
 0x78f   : > { %1321 = vrot.lane.b32.xlu0 %v1303_v61, %s1883_s21  ;;  %1318 = vrot.lane.b32.xlu1 %v1303_v61, %s1893_s27  ;;  %s1340_s21 = scalar_lea.sflag [#allocation4], %s2119_s5 }
 0x793   : > { %1324 = vrot.lane.b32.xlu1 %v1303_v61, %s1884_s23  ;;  %s1805_s23 = sshll.u32 %s1894_s9, 4  ;;  %s1806_s23 = int_to_ptr.vmem [resolvable:$false] %s1805_s23 }
 0x794   : > { %s1807_s29 = scalar_lea.vmem %s1806_s23, 256  ;;  %p1808_p12 = scmp.lt.s32.totalorder %s2490_s14, %s1806_s23 }
 0x795   : > { %p1809_p1 = scmp.lt.s32.totalorder %s1807_s29, %s1801_s19 }
 0x797   : > { %p1810_p2 = por %p1809_p1, %p1808_p12 }
 0x799   : > { %p1811_p4 = pnand %p1810_p2, %p1804_p7 }
 0x7f9   : > { %v1309_v62 = vpop.permute.xlu0 %1308  ;;  %v1306_v63 = vpop.permute.xlu1 %1305 }
 0x7fa   : > { %v1327_v4 = vsel %vm324_vm2, %v1302_v5, %v1306_v63 }
 0x7fb   : > { %v1328_v7 = vsel %vm285_vm1, %v1327_v4, %v1309_v62 }
 0x7fd   : > { %v1316_v6 = vpop.permute.xlu0 %1315  ;;  %v1312_v8 = vpop.permute.xlu1 %1311 }
 0x7fe   : > { %v1330_v9 = vsel %vm1329_vm3, %v1328_v7, %v1312_v8 }
 0x7ff   : > { %v1332_v10 = vsel %vm1331_vm4, %v1330_v9, %v1316_v6 }
 0x801   : > { %v1319_v0 = vpop.permute.xlu1 %1318  ;;  %v1322_v11 = vpop.permute.xlu0 %1321 }
 0x802   : > { %v1334_v13 = vsel %vm1333_vm5, %v1332_v10, %v1319_v0 }
 0x803   : > { %v1336_v1 = vsel %vm1335_vm6, %v1334_v13, %v1322_v11 }
 0x805   : > { %v1325_v12 = vpop.permute.xlu1 %1324 }
 0x806   : > { %v1337_v14 = vsel %vm1296_vm0, %v1336_v1, %v1325_v12 }
 0x807   : > { %1338 = vst [vmem:[%s257_s30] sm:$0xff] %v1337_v14 }
 0x808   : > { %1814 = shalt.err (!%p1811_p4)
}
 0x809   : > { %s1815_s5 = scalar_lea.hbm %s2488_s11, 128  ;;  %s1819_s8 = scalar_lea.hbm %s2537_s4, 256 }
 0x80a   : > { %p1816_p0 = scmp.ne.s32.totalorder %s2488_s11, %s1815_s5  ;;  %p1820_p8 = scmp.lt.u32.totalorder %s2488_s11, %s2537_s4 }
 0x80b   : > { %p1821_p13 = scmp.lt.u32.totalorder %s1819_s8, %s1815_s5  ;;  %p1823_p10 = scmp.lt.u32.totalorder %s1815_s5, %s2488_s11 }
 0x80c   : > { %p1817_p9 = pnand %p1816_p0, %p2074_p5 }
 0x80d   : > { %p1822_p6 = por %p1821_p13, %p1820_p8 }
 0x80e   : > { %p1818_p11 = pneg %p1817_p9 }
 0x80f   : > { %p1824_p3 = por %p1823_p10, %p1822_p6 }
 0x811   : > { %p1825_p7 = pnand %p1824_p3, %p1818_p11 }
 0x813   : > { %1828 = shalt.err (!%p1825_p7)
}
 0x814   : > { %1565 = dma.vmem_to_hbm [thread:$0]  (%p2074_p5), %s2490_s14, 128, %s2488_s11, %s1340_s21  }
 0x815 PF: > { %s1365_s27 = sand.u32 1, %s1863_s15   ;;  %p2567_p12 = scmp.ne.s32.totalorder %s2542_s22, 0 }
 0x816   : > { %p2568_p1 = scmp.ge.s32.totalorder %s1875_s18, 2  ;;  %s1366_s24 = scalar_lea.sflag [#allocation4], %s1365_s27 }
 0x818   : > { %p1582_p2 = pnand %p2568_p1, %p2567_p12 }
 0x81a   : > { %1858 = dma.done.wait (!%p1582_p2), %s1366_s24, 128  }
 0x81b   : > { %1860 = vsyncadd (!%p1582_p2), %s1366_s24, 4294967168  ;;  %p19_p4 = scmp.ge.s32.totalorder %s2060_s10, 4   ;;  %s2569_s15 = smov %s1867_s16 }
 0x81c   : > { %s2570_s16 = smov %s1871_s17  ;;  %s2571_s17 = smov %s2070_s12 }
 0x81d   : > { %s2572_s18 = smov %s2060_s10  ;;  %21 = sbr.rel (!%p19_p4) target bundleno = 7 (0x7), region = 99 }
 0x824   :  { %1371 = vsyncpa [#allocation3], 1 }
 0x825   :  { %1373 = vsyncpa [#allocation3 + $0x1], 1 }
 0x826   :  { %1374 = vsyncpa [#allocation6], 1 }
 0x827   :  { %1375 = vsyncpa [#allocation9], 1 }
 0x828   :  { %1376 = vsyncpa [#allocation4], 1 }
 0x829   :  { %1378 = vsyncpa [#allocation4 + $0x1], 1 }

</bundles_post_ra>
